<compile_context>
chip_gen: v7x
topology: tpu7x:2x2x1
jax: 0.10.0
libtpu: 0.0.40
codegen_flags: <defaults>
</compile_context>

<pallas_src>
import jax
import jax.numpy as jnp
from jax import lax
from jax.experimental import pallas as pl
from jax.experimental.pallas import tpu as pltpu


def _factorized_reduce_kernel(x_ref, w1_ref, w2_ref, se_ref, so_ref, b_ref, o_ref):
    # x_ref block: (1, C_in, H*W) -- one NCHW image with the spatial dims flattened.
    # w1_ref/w2_ref: (C_out, C_in) -- conv_1 / conv_2 weights, zero-padded to C_out rows
    #                and pre-scaled by the folded BatchNorm scale.
    # se_ref/so_ref: (H*W, Ho*Wo) -- 0/1 selection matrices picking the even/even and
    #                odd/odd stride-2 pixels (flattened output order).
    # b_ref: (C_out, 1) folded BatchNorm bias.  o_ref block: (1, C_out, Ho*Wo).
    hp = lax.Precision.HIGHEST

    # ReLU (elementwise, VPU).
    x = jnp.maximum(x_ref[0].astype(jnp.float32), 0.0)                  # (C_in, H*W)

    # Stride-2 spatial decimation as MXU matmuls (keeps strided gathers off the
    # lane dimension; the MXU is otherwise idle in this op).
    y_e = jnp.dot(x, se_ref[...], precision=hp,
                  preferred_element_type=jnp.float32)                   # (C_in, Ho*Wo)
    y_o = jnp.dot(x, so_ref[...], precision=hp,
                  preferred_element_type=jnp.float32)                   # (C_in, Ho*Wo)

    # Both 1x1 convs (BN scale already folded into the weights) + folded BN bias.
    out = (jnp.dot(w1_ref[...], y_e, precision=hp,
                   preferred_element_type=jnp.float32)
           + jnp.dot(w2_ref[...], y_o, precision=hp,
                     preferred_element_type=jnp.float32)
           + b_ref[...])                                                # (C_out, Ho*Wo)

    # Channel-major store with Ho*Wo on lanes (lane-dense layout).
    o_ref[0] = out.astype(o_ref.dtype)


def factorized_reduce_pallas(x_nchw, params):
    """FactorizedReduce forward (inference-mode BatchNorm with running stats)."""
    N, C_in, H, W = x_nchw.shape
    C_half = params["w1_oihw"].shape[0]
    C_out = 2 * C_half
    assert H % 2 == 0 and W % 2 == 0, "FactorizedReduce requires even spatial dims"
    Ho, Wo = H // 2, W // 2
    HW, HoWo = H * W, Ho * Wo

    # Metadata-only reshape (contiguous): no extra HBM pass over the activation.
    x_flat = x_nchw.reshape(N, C_in, HW)

    # Fold inference-mode BatchNorm into the conv weights (scale) and a bias vector.
    # TODO(synk): training-mode BatchNorm (batch statistics) is not implemented.
    eps = 1e-5
    scale = params["bn_gamma"] / jnp.sqrt(params["bn_var"] + eps)        # (C_out,)
    bias = (params["bn_beta"] - params["bn_mean"] * scale).reshape(C_out, 1)
    w1 = params["w1_oihw"][:, :, 0, 0] * scale[:C_half, None]            # (C_half, C_in)
    w2 = params["w2_oihw"][:, :, 0, 0] * scale[C_half:, None]            # (C_half, C_in)
    zeros = jnp.zeros((C_half, C_in), jnp.float32)
    w1e = jnp.concatenate([w1, zeros], axis=0)                           # (C_out, C_in)
    w2e = jnp.concatenate([zeros, w2], axis=0)                           # (C_out, C_in)

    # 0/1 selection matrices (built once, device-side): column i*Wo+j of s_ee picks
    # flattened pixel (2i, 2j); column i*Wo+j of s_oo picks pixel (2i+1, 2j+1).
    h_idx = jnp.arange(HW) // W
    w_idx = jnp.arange(HW) % W
    i_idx = jnp.arange(HoWo) // Wo
    j_idx = jnp.arange(HoWo) % Wo
    s_ee = ((h_idx[:, None] == 2 * i_idx[None, :]) &
            (w_idx[:, None] == 2 * j_idx[None, :])).astype(jnp.float32)  # (HW, HoWo)
    s_oo = ((h_idx[:, None] == 2 * i_idx[None, :] + 1) &
            (w_idx[:, None] == 2 * j_idx[None, :] + 1)).astype(jnp.float32)

    out_flat = pl.pallas_call(
        _factorized_reduce_kernel,
        out_shape=jax.ShapeDtypeStruct((N, C_out, HoWo), x_nchw.dtype),
        grid_spec=pltpu.PrefetchScalarGridSpec(
            num_scalar_prefetch=0,
            grid=(N,),
            in_specs=[
                pl.BlockSpec((1, C_in, HW), lambda n: (n, 0, 0)),
                pl.BlockSpec((C_out, C_in), lambda n: (0, 0)),
                pl.BlockSpec((C_out, C_in), lambda n: (0, 0)),
                pl.BlockSpec((HW, HoWo), lambda n: (0, 0)),
                pl.BlockSpec((HW, HoWo), lambda n: (0, 0)),
                pl.BlockSpec((C_out, 1), lambda n: (0, 0)),
            ],
            out_specs=pl.BlockSpec((1, C_out, HoWo), lambda n: (n, 0, 0)),
        ),
        compiler_params=pltpu.CompilerParams(dimension_semantics=("parallel",)),
    )(x_flat, w1e, w2e, s_ee, s_oo, bias)

    # Metadata-only reshape back to NCHW (channel-major order is already correct).
    return out_flat.reshape(N, C_out, Ho, Wo)


def init_params(key, C_in, C_out):
    """Deterministic synthetic parameters in PyTorch layouts."""
    assert C_out % 2 == 0
    ks = jax.random.split(key, 6)
    C_half = C_out // 2
    p = {}
    p["w1_oihw"] = 0.3 * jax.random.normal(ks[0], (C_half, C_in, 1, 1), jnp.float32)
    p["w2_oihw"] = 0.3 * jax.random.normal(ks[1], (C_half, C_in, 1, 1), jnp.float32)
    p["bn_gamma"] = 1.0 + 0.1 * jax.random.normal(ks[2], (C_out,), jnp.float32)
    p["bn_beta"] = 0.1 * jax.random.normal(ks[3], (C_out,), jnp.float32)
    p["bn_mean"] = 0.1 * jax.random.normal(ks[4], (C_out,), jnp.float32)
    p["bn_var"] = jax.random.uniform(ks[5], (C_out,), jnp.float32, 0.5, 1.5)
    return p


def reference_nchw(x, p):
    """Pure-JAX NCHW reference mirroring the PyTorch module (BN in eval mode)."""
    eps = 1e-5
    dn = ("NCHW", "OIHW", "NCHW")
    hp = lax.Precision.HIGHEST
    h = jnp.maximum(x, 0.0)
    o1 = lax.conv_general_dilated(h, p["w1_oihw"], (2, 2), "VALID",
                                  dimension_numbers=dn, precision=hp)
    o2 = lax.conv_general_dilated(h[:, :, 1:, 1:], p["w2_oihw"], (2, 2), "VALID",
                                  dimension_numbers=dn, precision=hp)
    out = jnp.concatenate([o1, o2], axis=1)
    scale = p["bn_gamma"] / jnp.sqrt(p["bn_var"] + eps)
    bias = p["bn_beta"] - p["bn_mean"] * scale
    return out * scale[None, :, None, None] + bias[None, :, None, None]


if __name__ == "__main__":
    key = jax.random.PRNGKey(0)
    kx, kp = jax.random.split(key)

    N, C_in, H, W = 2, 4, 16, 16
    C_out = 8

    x = jax.random.normal(kx, (N, C_in, H, W), jnp.float32)
    params = init_params(kp, C_in, C_out)

    out = factorized_reduce_pallas(x, params)
    out = jax.block_until_ready(out)

    ref = reference_nchw(x, params)
    assert out.shape == ref.shape, (out.shape, ref.shape)
    if not jnp.allclose(out, ref, rtol=1e-3, atol=1e-3):
        raise AssertionError(
            f"mismatch vs reference, max abs err = {jnp.max(jnp.abs(out - ref))}")

    print("KERNEL_OK")
</pallas_src>

<mosaic_0001>
module attributes {stable_mosaic.version = 11 : i64} {
  func.func @_factorized_reduce_kernel(%arg0: i32, %arg1: memref<1x4x256xf32, #tpu.memory_space<vmem>>, %arg2: memref<8x4xf32, #tpu.memory_space<vmem>>, %arg3: memref<8x4xf32, #tpu.memory_space<vmem>>, %arg4: memref<256x64xf32, #tpu.memory_space<vmem>>, %arg5: memref<256x64xf32, #tpu.memory_space<vmem>>, %arg6: memref<8x1xf32, #tpu.memory_space<vmem>>, %arg7: memref<1x8x64xf32, #tpu.memory_space<vmem>>) attributes {dimension_semantics = [#tpu.dimension_semantics<parallel>], iteration_bounds = array<i64: 2>, scalar_prefetch = 0 : i64, scratch_operands = 0 : i64, tpu.core_type = #tpu.core_type<tc>, window_params = [{transform_indices = @transform_0, window_bounds = array<i64: 1, 4, 256>}, {pipeline_mode = #tpu.pipeline_mode<synchronous>, transform_indices = @transform_1, window_bounds = array<i64: 8, 4>}, {pipeline_mode = #tpu.pipeline_mode<synchronous>, transform_indices = @transform_2, window_bounds = array<i64: 8, 4>}, {pipeline_mode = #tpu.pipeline_mode<synchronous>, transform_indices = @transform_3, window_bounds = array<i64: 256, 64>}, {pipeline_mode = #tpu.pipeline_mode<synchronous>, transform_indices = @transform_4, window_bounds = array<i64: 256, 64>}, {pipeline_mode = #tpu.pipeline_mode<synchronous>, transform_indices = @transform_5, window_bounds = array<i64: 8, 1>}, {transform_indices = @transform_6, window_bounds = array<i64: 1, 8, 64>}]} {
    %c0 = arith.constant 0 : index
    %c0_0 = arith.constant 0 : index
    %c0_1 = arith.constant 0 : index
    %0 = vector.load %arg1[%c0, %c0_0, %c0_1] : memref<1x4x256xf32, #tpu.memory_space<vmem>>, vector<1x4x256xf32>
    %1 = vector.shape_cast %0 : vector<1x4x256xf32> to vector<4x256xf32>
    %cst = arith.constant 0.000000e+00 : f32
    %2 = vector.broadcast %cst : f32 to vector<4x256xf32>
    %3 = arith.maximumf %1, %2 : vector<4x256xf32>
    %c0_2 = arith.constant 0 : index
    %c0_3 = arith.constant 0 : index
    %4 = vector.load %arg4[%c0_2, %c0_3] : memref<256x64xf32, #tpu.memory_space<vmem>>, vector<256x64xf32>
    %cst_4 = arith.constant dense<0.000000e+00> : vector<4x64xf32>
    %5 = tpu.matmul %3, %4, %cst_4 {dimension_numbers = #tpu.dot_dimension_numbers<[1], [0], [0], [1], [0, 0, 1, 1], [], []>, precision = #tpu.contract_precision<fp32>} : vector<4x256xf32>, vector<256x64xf32>, vector<4x64xf32> -> vector<4x64xf32>
    %c0_5 = arith.constant 0 : index
    %c0_6 = arith.constant 0 : index
    %6 = vector.load %arg5[%c0_5, %c0_6] : memref<256x64xf32, #tpu.memory_space<vmem>>, vector<256x64xf32>
    %cst_7 = arith.constant dense<0.000000e+00> : vector<4x64xf32>
    %7 = tpu.matmul %3, %6, %cst_7 {dimension_numbers = #tpu.dot_dimension_numbers<[1], [0], [0], [1], [0, 0, 1, 1], [], []>, precision = #tpu.contract_precision<fp32>} : vector<4x256xf32>, vector<256x64xf32>, vector<4x64xf32> -> vector<4x64xf32>
    %c0_8 = arith.constant 0 : index
    %c0_9 = arith.constant 0 : index
    %8 = vector.load %arg2[%c0_8, %c0_9] : memref<8x4xf32, #tpu.memory_space<vmem>>, vector<8x4xf32>
    %cst_10 = arith.constant dense<0.000000e+00> : vector<8x64xf32>
    %9 = tpu.matmul %8, %5, %cst_10 {dimension_numbers = #tpu.dot_dimension_numbers<[1], [0], [0], [1], [0, 0, 1, 1], [], []>, precision = #tpu.contract_precision<fp32>} : vector<8x4xf32>, vector<4x64xf32>, vector<8x64xf32> -> vector<8x64xf32>
    %c0_11 = arith.constant 0 : index
    %c0_12 = arith.constant 0 : index
    %10 = vector.load %arg3[%c0_11, %c0_12] : memref<8x4xf32, #tpu.memory_space<vmem>>, vector<8x4xf32>
    %cst_13 = arith.constant dense<0.000000e+00> : vector<8x64xf32>
    %11 = tpu.matmul %10, %7, %cst_13 {dimension_numbers = #tpu.dot_dimension_numbers<[1], [0], [0], [1], [0, 0, 1, 1], [], []>, precision = #tpu.contract_precision<fp32>} : vector<8x4xf32>, vector<4x64xf32>, vector<8x64xf32> -> vector<8x64xf32>
    %12 = arith.addf %9, %11 : vector<8x64xf32>
    %c0_14 = arith.constant 0 : index
    %c0_15 = arith.constant 0 : index
    %13 = vector.load %arg6[%c0_14, %c0_15] : memref<8x1xf32, #tpu.memory_space<vmem>>, vector<8x1xf32>
    %14 = vector.broadcast %13 : vector<8x1xf32> to vector<8x64xf32>
    %15 = arith.addf %12, %14 : vector<8x64xf32>
    %c0_16 = arith.constant 0 : index
    %c0_17 = arith.constant 0 : index
    %c0_18 = arith.constant 0 : index
    %16 = vector.load %arg7[%c0_16, %c0_17, %c0_18] : memref<1x8x64xf32, #tpu.memory_space<vmem>>, vector<1x8x64xf32>
    %17 = vector.shape_cast %16 : vector<1x8x64xf32> to vector<8x64xf32>
    %18 = vector.shape_cast %15 : vector<8x64xf32> to vector<1x8x64xf32>
    tpu.vector_store %arg7[%c0_16, %c0_17, %c0_18], %18 {strides = array<i32>} : memref<1x8x64xf32, #tpu.memory_space<vmem>>, vector<1x8x64xf32>,
    return
  }
  func.func @transform_0(%arg0: i32) -> (i32, i32, i32) {
    %c0_i32 = arith.constant 0 : i32
    %c0_i32_0 = arith.constant 0 : i32
    %c0_i32_1 = arith.constant 0 : i32
    return %arg0, %c0_i32, %c0_i32_0 : i32, i32, i32
  }
  func.func @transform_1(%arg0: i32) -> (i32, i32) {
    %c0_i32 = arith.constant 0 : i32
    %c0_i32_0 = arith.constant 0 : i32
    %c0_i32_1 = arith.constant 0 : i32
    return %c0_i32, %c0_i32_0 : i32, i32
  }
  func.func @transform_2(%arg0: i32) -> (i32, i32) {
    %c0_i32 = arith.constant 0 : i32
    %c0_i32_0 = arith.constant 0 : i32
    %c0_i32_1 = arith.constant 0 : i32
    return %c0_i32, %c0_i32_0 : i32, i32
  }
  func.func @transform_3(%arg0: i32) -> (i32, i32) {
    %c0_i32 = arith.constant 0 : i32
    %c0_i32_0 = arith.constant 0 : i32
    %c0_i32_1 = arith.constant 0 : i32
    return %c0_i32, %c0_i32_0 : i32, i32
  }
  func.func @transform_4(%arg0: i32) -> (i32, i32) {
    %c0_i32 = arith.constant 0 : i32
    %c0_i32_0 = arith.constant 0 : i32
    %c0_i32_1 = arith.constant 0 : i32
    return %c0_i32, %c0_i32_0 : i32, i32
  }
  func.func @transform_5(%arg0: i32) -> (i32, i32) {
    %c0_i32 = arith.constant 0 : i32
    %c0_i32_0 = arith.constant 0 : i32
    %c0_i32_1 = arith.constant 0 : i32
    return %c0_i32, %c0_i32_0 : i32, i32
  }
  func.func @transform_6(%arg0: i32) -> (i32, i32, i32) {
    %c0_i32 = arith.constant 0 : i32
    %c0_i32_0 = arith.constant 0 : i32
    %c0_i32_1 = arith.constant 0 : i32
    return %arg0, %c0_i32, %c0_i32_0 : i32, i32, i32
  }
}

</mosaic_0001>

<bundles_post_ra>
// kernel: tpu_custom_call.1
= control target key start
LH: loop header
LB: loop body
LE: loop exit
PB: predicated region body
PF: predicated region fallthrough
CT: control target
= control target key end

     0   :  { %11 = vsyncpa [#allocation3], 0  ;;  %s5543_s0 = inlined_call_operand.vmem [shape: f32[2,4,256], index: 0, kind: input, shape index: {}]   ;;  %s5544_s1 = inlined_call_operand.vmem [shape: f32[8,4], index: 1, kind: input, shape index: {}]   ;;  %s5545_s2 = inlined_call_operand.vmem [shape: f32[8,4], index: 2, kind: input, shape index: {}]   ;;  %s5546_s3 = inlined_call_operand.vmem [shape: f32[256,64], index: 3, kind: input, shape index: {}]   ;;  %s5547_s4 = inlined_call_operand.vmem [shape: f32[256,64], index: 4, kind: input, shape index: {}]   ;;  %s5548_s5 = inlined_call_operand.vmem [shape: f32[8,1], index: 5, kind: input, shape index: {}]   ;;  %s5549_s6 = inlined_call_operand.hbm [shape: f32[2,8,64], index: 6, kind: output, shape index: {}]  }
   0x1   :  { %13 = vsyncpa [#allocation3 + $0x1], 0  ;;  %s4079_s21 = smov 0   ;;  %s4081_s22 = smov 0  }
   0x2   :  { %s4083_s23 = smov 0   ;;  %s4085_s24 = smov 0  }
   0x3 LB: > { %s4100_s25 = sadd.s32 4294967295, %s4038_s24   ;;  %s3033_s26 = sadd.s32 4294967294, %s4038_s24   ;;  %s4038_s24 = sphi %s4085_s24, %s5931_s24   ;;  %s4034_s23 = sphi %s4083_s23, %s5930_s23   ;;  %s4030_s22 = sphi %s4081_s22, %s5929_s22   ;;  %s4026_s21 = sphi %s4079_s21, %s5928_s21  }
   0x4   : > { %s4104_s27 = sadd.s32 1, %s4038_s24   ;;  %s157_s28 = sadd.s32 1, %s4034_s23 }
   0x5   : > { %s154_s29 = ssub.s32 %s4038_s24, %s4104_s27  ;;  %p167_p0 = scmp.ne.s32.totalorder %s4034_s23, %s4030_s22 }
   0x6   : > { %p155_p1 = scmp.eq.s32.totalorder %s154_s29, 0  ;;  %p168_p2 = scmp.eq.s32.totalorder %s4100_s25, 1 }
   0x7   : > { %p173_p3 = scmp.ne.s32.totalorder %s4030_s22, %s4026_s21  ;;  %p174_p4 = scmp.eq.s32.totalorder %s3033_s26, 1 }
   0x8   : > { %s4115_s30 = scalar_select %p155_p1, %s4034_s23, %s157_s28  }
   0x9   : > { %p4117_p5 = por %p168_p2, %p167_p0  ;;  %p4121_p6 = por %p174_p4, %p173_p3 }
   0xa   : > { %p3036_p7 = scmp.ge.s32.totalorder %s4038_s24, 1  ;;  %p215_p8 = scmp.lt.s32.totalorder %s4038_s24, 3 }
   0xc   : > { %p216_p9 = pnand %p3036_p7, %p215_p8 }
   0xe   : > { %219 = sbr.rel (%p216_p9) target bundleno = 732 (0x2dc), region = 44 }
  0x15   : > { %v268_v0 = vld [vmem:[%s5546_s3 + $0x80] sm:$0xff]  ;;  %v269_v1 = vld [vmem:[%s5546_s3 + $0x88] sm:$0xff]  ;;  %v270_v7 = vld [vmem:[%s5546_s3 + $0x90] sm:$0xff]  ;;  %p245_p10 = scmp.lt.s32.totalorder %s4100_s25, 1  ;;  %vm4041_vm0 = vmmov 0   ;;  %vm2045_vm1 = vcmask 31744  }
  0x16   : > { %v252_v2 = vld [vmem:[%s5546_s3] sm:$0xff]  ;;  %v336_v3 = vand.u32 4294901760, %v268_v0  ;;  %v339_v4 = vand.u32 4294901760, %v269_v1  ;;  %v253_v5 = vld [vmem:[%s5546_s3 + $0x8] sm:$0xff]  ;;  %v271_v8 = vld [vmem:[%s5546_s3 + $0x98] sm:$0xff]  ;;  %v342_v10 = vand.u32 4294901760, %v270_v7 }
  0x17   : > { %v288_v6 = vand.u32 4294901760, %v252_v2  ;;  %v291_v9 = vand.u32 4294901760, %v253_v5  ;;  %v345_v11 = vand.u32 4294901760, %v271_v8  ;;  %v254_v12 = vld [vmem:[%s5546_s3 + $0x10] sm:$0xff]  ;;  %v255_v13 = vld [vmem:[%s5546_s3 + $0x18] sm:$0xff]  ;;  %v272_v18 = vld [vmem:[%s5546_s3 + $0xa0] sm:$0xff] }
  0x18   : > { %v4151_v14 = vpack.c.bf16 %v339_v4, %v336_v3  ;;  %v294_v16 = vand.u32 4294901760, %v254_v12  ;;  %v297_v17 = vand.u32 4294901760, %v255_v13  ;;  %v273_v19 = vld [vmem:[%s5546_s3 + $0xa8] sm:$0xff]  ;;  %v256_v23 = vld [vmem:[%s5546_s3 + $0x20] sm:$0xff]  ;;  %v4174_v25 = vsub.f32 %v270_v7, %v342_v10  ;;  %v274_v37 = vld [vmem:[%s5546_s3 + $0xb0] sm:$0xff]  ;;  %s4351_s18 = scalar_select %p245_p10, %s4100_s25, 1 }
  0x19   : > { %v4153_v15 = vsub.f32 %v252_v2, %v288_v6  ;;  %v4161_v20 = vpack.c.bf16 %v291_v9, %v288_v6  ;;  %v4163_v21 = vsub.f32 %v253_v5, %v291_v9  ;;  %v4165_v22 = vpack.c.bf16 %v345_v11, %v342_v10  ;;  %v257_v24 = vld [vmem:[%s5546_s3 + $0x28] sm:$0xff]  ;;  %v275_v42 = vld [vmem:[%s5546_s3 + $0xb8] sm:$0xff]  ;;  %v258_v55 = vld [vmem:[%s5546_s3 + $0x30] sm:$0xff]  ;;  %s242_s13 = sand.u32 1, %s4030_s22   ;;  %s3041_s15 = sshll.u32 %s4100_s25, 7 }
  0x1a   : > { %3550 = vmatprep.subr.bf16.mxu0 %v4151_v14  ;;  %v4176_v26 = vsub.f32 %v271_v8, %v345_v11  ;;  %v4178_v27 = vpack.c.bf16 %v297_v17, %v294_v16  ;;  %v4180_v28 = vsub.f32 %v254_v12, %v294_v16  ;;  %v348_v29 = vand.u32 4294901760, %v272_v18  ;;  %v259_v56 = vld [vmem:[%s5546_s3 + $0x38] sm:$0xff]  ;;  %v276_v5 = vld [vmem:[%s5546_s3 + $0xc0] sm:$0xff]  ;;  %v277_v6 = vld [vmem:[%s5546_s3 + $0xc8] sm:$0xff]  ;;  %s3044_s10 = sshll.u32 %s4351_s18, 3  ;;  %s3037_s14 = sshll.u32 %s242_s13, 3 }
  0x1b   : > { %3552 = vmatpush3.bf16.msra.mxu0 %v4161_v20  ;;  %v351_v30 = vand.u32 4294901760, %v273_v19  ;;  %v4183_v31 = vsub.f32 %v268_v0, %v336_v3  ;;  %v4185_v32 = vsub.f32 %v269_v1, %v339_v4  ;;  %v300_v33 = vand.u32 4294901760, %v256_v23  ;;  %v260_v11 = vld [vmem:[%s5546_s3 + $0x40] sm:$0xff]  ;;  %s249_s17 = scalar_lea.vmem %s5543_s0, %s3044_s10  ;;  %s244_s16 = scalar_lea.vmem [#allocation2], %s3037_s14 }
  0x1c   : > { %3554 = vmatprep.subr.bf16.mxu0 %v4165_v22  ;;  %v303_v34 = vand.u32 4294901760, %v257_v24  ;;  %v5567_v35 = vand.u32 4294901760, %v4153_v15  ;;  %v5566_v36 = vand.u32 4294901760, %v4163_v21  ;;  %v4193_v38 = vsub.f32 %v255_v13, %v297_v17  ;;  %s5501_s20 = scalar_lea.hbm %s5549_s6, %s3041_s15  ;;  %s2961_s26 = scalar_lea.sflag [#allocation3], %s242_s13 }
  0x1d   : > { %v4195_v39 = vpack.c.bf16 %v351_v30, %v348_v29  ;;  %v4197_v40 = vsub.f32 %v272_v18, %v348_v29  ;;  %v5569_v41 = vand.u32 4294901760, %v4183_v31  ;;  %v4203_v43 = vsub.f32 %v273_v19, %v351_v30  ;;  %v261_v29 = vld [vmem:[%s5546_s3 + $0x48] sm:$0xff]  ;;  %s4043_s25 = smov [#allocation2]  }
  0x1e   : > { %v5568_v44 = vand.u32 4294901760, %v4185_v32  ;;  %v4206_v45 = vpack.c.bf16 %v303_v34, %v300_v33  ;;  %v4208_v46 = vsub.f32 %v256_v23, %v300_v33  ;;  %v403_v48 = vsub.f32 %v4153_v15, %v5567_v35  ;;  %s3980_s29 = sshll.u32 %s4043_s25, 4  ;;  %s3981_s29 = int_to_ptr.vmem [resolvable:$false] %s3980_s29 }
  0x1f   : > { %3556 = vmatpush3.bf16.msra.mxu0 %v4178_v27  ;;  %v515_v47 = vsub.f32 %v4183_v31, %v5569_v41  ;;  %v410_v49 = vsub.f32 %v4163_v21, %v5566_v36  ;;  %v354_v50 = vand.u32 4294901760, %v274_v37  ;;  %v357_v52 = vand.u32 4294901760, %v275_v42  ;;  %v250_v41 = vld [vmem:[%s249_s17] sm:$0xff]  ;;  %s2974_s17 = sshll.u32 %s244_s16, 4  ;;  %s3982_s9 = scalar_lea.vmem %s3981_s29, 256  ;;  %s5503_s17 = int_to_ptr.vmem [resolvable:$true] %s2974_s17 }
  0x20   : > { %3558 = vmatprep.subr.bf16.mxu0 %v4195_v39  ;;  %v522_v51 = vsub.f32 %v4185_v32, %v5568_v44  ;;  %v5565_v53 = vand.u32 4294901760, %v4174_v25  ;;  %v5562_v54 = vand.u32 4294901760, %v4176_v26  ;;  %v4232_v58 = vsub.f32 %v257_v24, %v303_v34  ;;  %s3976_s28 = scalar_lea.vmem %s5503_s17, 128  ;;  %p3983_p0 = scmp.lt.s32.totalorder %s5503_s17, %s3981_s29 }
  0x21   : > { %v516_v57 = vand.u32 4294901760, %v515_v47  ;;  %v404_v59 = vand.u32 4294901760, %v403_v48  ;;  %v411_v60 = vand.u32 4294901760, %v410_v49  ;;  %v4234_v62 = vpack.c.bf16 %v357_v52, %v354_v50  ;;  %p3977_p11 = scmp.ne.s32.totalorder %s5503_s17, %s3976_s28  ;;  %p3984_p1 = scmp.lt.s32.totalorder %s3982_s9, %s3976_s28 }
  0x22   : > { %v523_v61 = vand.u32 4294901760, %v522_v51  ;;  %v4236_v63 = vsub.f32 %v274_v37, %v354_v50  ;;  %v529_v0 = vsub.f32 %v4174_v25, %v5565_v53  ;;  %v536_v2 = vsub.f32 %v4176_v26, %v5562_v54 }
  0x23   : > { %3560 = vmatpush3.bf16.msra.mxu0 %v4206_v45  ;;  %v3583_v1 = vpack.c.bf16 %v411_v60, %v404_v59  ;;  %v306_v3 = vand.u32 4294901760, %v258_v55  ;;  %v309_v4 = vand.u32 4294901760, %v259_v56  ;;  %v5561_v9 = vand.u32 4294901760, %v4180_v28  ;;  %p3978_p12 = pnand %p3977_p11, %p4117_p5  ;;  %p3985_p2 = por %p3984_p1, %p3983_p0 }
  0x24   : > { %v3581_v7 = vpack.c.bf16 %v523_v61, %v516_v57  ;;  %3562 = vmatprep.subr.bf16.mxu0 %v4234_v62  ;;  %v530_v8 = vand.u32 4294901760, %v529_v0  ;;  %v5558_v10 = vand.u32 4294901760, %v4193_v38  ;;  %v4257_v12 = vsub.f32 %v275_v42, %v357_v52  ;;  %v279_v57 = vld [vmem:[%s5546_s3 + $0xd8] sm:$0xff] }
  0x25   : > { %v537_v13 = vand.u32 4294901760, %v536_v2  ;;  %v4259_v16 = vpack.c.bf16 %v309_v4, %v306_v3  ;;  %v4261_v17 = vsub.f32 %v258_v55, %v306_v3  ;;  %v417_v18 = vsub.f32 %v4180_v28, %v5561_v9  ;;  %p3979_p13 = pneg %p3978_p12 }
  0x26   : > { %3582 = vmatprep.subr.bf16.mxu1 %v3581_v7  ;;  %v424_v19 = vsub.f32 %v4193_v38, %v5558_v10  ;;  %v360_v23 = vand.u32 4294901760, %v276_v5  ;;  %v363_v24 = vand.u32 4294901760, %v277_v6  ;;  %v5557_v33 = vand.u32 4294901760, %v4197_v40 }
  0x27   : > { %3584 = vmatpush3.bf16.msra.mxu1 %v3583_v1  ;;  %v3585_v30 = vpack.c.bf16 %v537_v13, %v530_v8  ;;  %3564 = vmatpush3.bf16.msra.mxu0 %v4259_v16  ;;  %v5555_v34 = vand.u32 4294901760, %v4203_v43  ;;  %v312_v37 = vand.u32 4294901760, %v260_v11  ;;  %v4275_v42 = vsub.f32 %v259_v56, %v309_v4  ;;  %v278_v56 = vld [vmem:[%s5546_s3 + $0xd0] sm:$0xff]  ;;  %p3986_p3 = pnand %p3985_p2, %p3979_p13 }
  0x28   : > { %v418_v47 = vand.u32 4294901760, %v417_v18  ;;  %v425_v48 = vand.u32 4294901760, %v424_v19  ;;  %v4277_v49 = vpack.c.bf16 %v363_v24, %v360_v23  ;;  %v4279_v50 = vsub.f32 %v276_v5, %v360_v23  ;;  %v262_v1 = vld [vmem:[%s5546_s3 + $0x50] sm:$0xff]  ;;  %v263_v18 = vld [vmem:[%s5546_s3 + $0x58] sm:$0xff] }
  0x29   : > { %3586 = vmatprep.subr.bf16.mxu1 %v3585_v30  ;;  %v543_v51 = vsub.f32 %v4197_v40, %v5557_v33  ;;  %v550_v52 = vsub.f32 %v4203_v43, %v5555_v34  ;;  %v315_v55 = vand.u32 4294901760, %v261_v29  ;;  %v4294_v60 = vsub.f32 %v277_v6, %v363_v24 }
  0x2a   : > { %v3587_v59 = vpack.c.bf16 %v425_v48, %v418_v47  ;;  %3566 = vmatprep.subr.bf16.mxu0 %v4277_v49  ;;  %v5554_v61 = vand.u32 4294901760, %v4208_v46  ;;  %v5552_v0 = vand.u32 4294901760, %v4232_v58  ;;  %v4303_v5 = vsub.f32 %v260_v11, %v312_v37 }
  0x2b   : > { %v544_v2 = vand.u32 4294901760, %v543_v51  ;;  %v551_v3 = vand.u32 4294901760, %v550_v52  ;;  %v4301_v4 = vpack.c.bf16 %v315_v55, %v312_v37  ;;  %v366_v8 = vand.u32 4294901760, %v278_v56 }
  0x2c   : > { %3588 = vmatpush3.bf16.msra.mxu1 %v3587_v59  ;;  %v431_v6 = vsub.f32 %v4208_v46, %v5554_v61  ;;  %v438_v7 = vsub.f32 %v4232_v58, %v5552_v0  ;;  %v369_v13 = vand.u32 4294901760, %v279_v57  ;;  %v5551_v11 = vand.u32 4294901760, %v4236_v63 }
  0x2d   : > { %5649 = vst [vmem:[#allocation5_spill] sm:$0xff] %v4301_v4  ;;  %v3589_v19 = vpack.c.bf16 %v551_v3, %v544_v2  ;;  %3568 = vmatpush3.bf16.msra.mxu0 %v4301_v4  ;;  %v5550_v23 = vand.u32 4294901760, %v4257_v12  ;;  %v318_v24 = vand.u32 4294901760, %v262_v1  ;;  %v4318_v30 = vsub.f32 %v261_v29, %v315_v55  ;;  %v280_v29 = vld [vmem:[%s5546_s3 + $0xe0] sm:$0xff]  ;;  %v281_v55 = vld [vmem:[%s5546_s3 + $0xe8] sm:$0xff] }
  0x2e   : > { %v432_v37 = vand.u32 4294901760, %v431_v6  ;;  %v439_v47 = vand.u32 4294901760, %v438_v7  ;;  %v4320_v48 = vpack.c.bf16 %v369_v13, %v366_v8  ;;  %v4322_v51 = vsub.f32 %v278_v56, %v366_v8  ;;  %v264_v8 = vld [vmem:[%s5546_s3 + $0x60] sm:$0xff] }
  0x2f   : > { %3590 = vmatprep.subr.bf16.mxu1 %v3589_v19  ;;  %v557_v52 = vsub.f32 %v4236_v63, %v5551_v11  ;;  %v564_v59 = vsub.f32 %v4257_v12, %v5550_v23  ;;  %v321_v2 = vand.u32 4294901760, %v263_v18  ;;  %v4337_v3 = vsub.f32 %v279_v57, %v369_v13 }
  0x30   : > { %5650 = vst [vmem:[#allocation6_spill] sm:$0xff] %v4320_v48  ;;  %v3591_v56 = vpack.c.bf16 %v439_v47, %v432_v37  ;;  %3570 = vmatprep.subr.bf16.mxu0 %v4320_v48  ;;  %v5553_v6 = vand.u32 4294901760, %v4261_v17  ;;  %v5556_v7 = vand.u32 4294901760, %v4275_v42  ;;  %v4346_v0 = vsub.f32 %v262_v1, %v318_v24 }
  0x31   : > { %v558_v19 = vand.u32 4294901760, %v557_v52  ;;  %v565_v23 = vand.u32 4294901760, %v564_v59  ;;  %v4344_v11 = vpack.c.bf16 %v321_v2, %v318_v24  ;;  %v372_v37 = vand.u32 4294901760, %v280_v29  ;;  %v265_v52 = vld [vmem:[%s5546_s3 + $0x68] sm:$0xff] }
  0x32   : > { %3592 = vmatpush3.bf16.msra.mxu1 %v3591_v56  ;;  %v445_v57 = vsub.f32 %v4261_v17, %v5553_v6  ;;  %v452_v13 = vsub.f32 %v4275_v42, %v5556_v7  ;;  %v375_v47 = vand.u32 4294901760, %v281_v55  ;;  %v5560_v24 = vand.u32 4294901760, %v4279_v50 }
  0x33   : > { %5651 = vst [vmem:[#allocation7_spill] sm:$0xff] %v4344_v11  ;;  %v3593_v1 = vpack.c.bf16 %v565_v23, %v558_v19  ;;  %3572 = vmatpush3.bf16.msra.mxu0 %v4344_v11  ;;  %v5559_v59 = vand.u32 4294901760, %v4294_v60  ;;  %v324_v56 = vand.u32 4294901760, %v264_v8  ;;  %v4365_v6 = vsub.f32 %v263_v18, %v321_v2  ;;  %v282_v18 = vld [vmem:[%s5546_s3 + $0xf0] sm:$0xff]  ;;  %v283_v2 = vld [vmem:[%s5546_s3 + $0xf8] sm:$0xff] }
  0x34   : > { %v446_v61 = vand.u32 4294901760, %v445_v57  ;;  %v453_v34 = vand.u32 4294901760, %v452_v13  ;;  %v4367_v7 = vpack.c.bf16 %v375_v47, %v372_v37  ;;  %v4369_v33 = vsub.f32 %v280_v29, %v372_v37 }
  0x35   : > { %3594 = vmatprep.subr.bf16.mxu1 %v3593_v1  ;;  %v571_v23 = vsub.f32 %v4279_v50, %v5560_v24  ;;  %v578_v19 = vsub.f32 %v4294_v60, %v5559_v59  ;;  %v327_v10 = vand.u32 4294901760, %v265_v52  ;;  %v4385_v57 = vsub.f32 %v281_v55, %v375_v47  ;;  %v266_v1 = vld [vmem:[%s5546_s3 + $0x70] sm:$0xff] }
  0x36   : > { %5652 = vst [vmem:[#allocation8_spill] sm:$0xff] %v4367_v7  ;;  %v3595_v29 = vpack.c.bf16 %v453_v34, %v446_v61  ;;  %3574 = vmatprep.subr.bf16.mxu0 %v4367_v7  ;;  %v5563_v13 = vand.u32 4294901760, %v4303_v5  ;;  %v5564_v37 = vand.u32 4294901760, %v4318_v30  ;;  %v4394_v54 = vsub.f32 %v264_v8, %v324_v56 }
  0x37   : > { %v572_v59 = vand.u32 4294901760, %v571_v23  ;;  %v579_v24 = vand.u32 4294901760, %v578_v19  ;;  %v4392_v9 = vpack.c.bf16 %v327_v10, %v324_v56  ;;  %v378_v55 = vand.u32 4294901760, %v282_v18  ;;  %v267_v23 = vld [vmem:[%s5546_s3 + $0x78] sm:$0xff] }
  0x38   : > { %3596 = vmatpush3.bf16.msra.mxu1 %v3595_v29  ;;  %v459_v34 = vsub.f32 %v4303_v5, %v5563_v13  ;;  %v466_v61 = vsub.f32 %v4318_v30, %v5564_v37  ;;  %v381_v47 = vand.u32 4294901760, %v283_v2  ;;  %v5574_v56 = vand.u32 4294901760, %v4322_v51 }
  0x39   : > { %5653 = vst [vmem:[#allocation9_spill] sm:$0xff] %v4392_v9  ;;  %v3597_v8 = vpack.c.bf16 %v579_v24, %v572_v59  ;;  %3576 = vmatpush3.bf16.msra.mxu0 %v4392_v9  ;;  %v5572_v19 = vand.u32 4294901760, %v4337_v3  ;;  %v330_v29 = vand.u32 4294901760, %v266_v1  ;;  %v4411_v13 = vsub.f32 %v265_v52, %v327_v10 }
  0x3a   : > { %v460_v37 = vand.u32 4294901760, %v459_v34  ;;  %v467_v53 = vand.u32 4294901760, %v466_v61  ;;  %v4413_v36 = vpack.c.bf16 %v381_v47, %v378_v55  ;;  %v4415_v35 = vsub.f32 %v282_v18, %v378_v55 }
  0x3b   : > { %3598 = vmatprep.subr.bf16.mxu1 %v3597_v8  ;;  %v585_v24 = vsub.f32 %v4322_v51, %v5574_v56  ;;  %v592_v59 = vsub.f32 %v4337_v3, %v5572_v19  ;;  %v333_v44 = vand.u32 4294901760, %v267_v23  ;;  %v4424_v10 = vsub.f32 %v283_v2, %v381_v47 }
  0x3c   : > { %5654 = vst [vmem:[#allocation10_spill] sm:$0xff] %v4413_v36  ;;  %v3599_v9 = vpack.c.bf16 %v467_v53, %v460_v37  ;;  %3578 = vmatprep.subr.bf16.mxu0 %v4413_v36  ;;  %v5573_v52 = vand.u32 4294901760, %v4346_v0  ;;  %v5575_v18 = vand.u32 4294901760, %v4365_v6  ;;  %v4430_v8 = vsub.f32 %v266_v1, %v330_v29 }
  0x3d   : > { %v586_v34 = vand.u32 4294901760, %v585_v24  ;;  %v593_v61 = vand.u32 4294901760, %v592_v59  ;;  %v4428_v55 = vpack.c.bf16 %v333_v44, %v330_v29  ;;  %v251_v2 = vmax.f32 %v250_v41, 0.0 }
  0x3e   : > { %5656 = vst [vmem:[#allocation12_spill] sm:$0xff] %v4430_v8  ;;  %3600 = vmatpush3.bf16.msra.mxu1 %v3599_v9  ;;  %v473_v19 = vsub.f32 %v4346_v0, %v5573_v52  ;;  %v480_v53 = vsub.f32 %v4365_v6, %v5575_v18  ;;  %v5578_v37 = vand.u32 4294901760, %v4369_v33  ;;  %v5583_v24 = vand.u32 4294901760, %v4385_v57 }
  0x3f   : > { %5655 = vst [vmem:[#allocation11_spill] sm:$0xff] %v4428_v55  ;;  %v3601_v47 = vpack.c.bf16 %v593_v61, %v586_v34  ;;  %3580 = vmatpush3.bf16.msra.mxu0 %v4428_v55  ;;  %v3613_v1 = vpack.c.bf16 %v4185_v32, %v4183_v31  ;;  %v5584_v9 = vand.u32 4294901760, %v4394_v54  ;;  %v285_v52 = vcombine.high %v251_v2, %v251_v2 }
  0x40   : > { %v474_v29 = vand.u32 4294901760, %v473_v19  ;;  %v481_v59 = vand.u32 4294901760, %v480_v53  ;;  %v4444_v56 = vand.u32 4294901760, %v251_v2  ;;  %v599_v41 = vsub.f32 %v4369_v33, %v5578_v37 }
  0x41   : > { %3602 = vmatprep.subr.bf16.mxu1 %v3601_v47  ;;  %v606_v34 = vsub.f32 %v4385_v57, %v5583_v24  ;;  %3614 = vmatprep.subr.bf16.mxu0 %v3613_v1  ;;  %v487_v61 = vsub.f32 %v4394_v54, %v5584_v9  ;;  %v493_v19 = vand.u32 4294901760, %v4411_v13  ;;  %v4456_v53 = vsub.f32 %v267_v23, %v333_v44 }
  0x42   : > { %5657 = vst [vmem:[#allocation13_spill] sm:$0xff] %v4444_v56  ;;  %v3603_v18 = vpack.c.bf16 %v481_v59, %v474_v29  ;;  %v4458_v55 = vand.u32 4294901760, %v285_v52  ;;  %v4461_v47 = vsub.f32 %v251_v2, %v4444_v56  ;;  %v600_v37 = vand.u32 4294901760, %v599_v41 }
  0x43   : > { %v607_v36 = vand.u32 4294901760, %v606_v34  ;;  %v488_v7 = vand.u32 4294901760, %v487_v61  ;;  %v494_v24 = vsub.f32 %v4411_v13, %v493_v19  ;;  %v612_v44 = vand.u32 4294901760, %v4415_v35 }
  0x44   : > { %5658 = vst [vmem:[#allocation14_spill] sm:$0xff] %v4458_v55  ;;  %5659 = vst [vmem:[#allocation15_spill] sm:$0xff] %v4461_v47  ;;  %3604 = vmatpush3.bf16.msra.mxu1 %v3603_v18  ;;  %v4465_v1 = vsub.f32 %v285_v52, %v4458_v55  ;;  %v4468_v9 = vand.u32 4294901760, %v4461_v47  ;;  %v619_v23 = vand.u32 4294901760, %v4424_v10  ;;  %624 = vmatprep.mubr.f32.mxu1 %v4458_v55  ;;  %v500_v59 = vand.u32 4294901760, %v4430_v8 }
  0x45   : > { %v3605_v2 = vpack.c.bf16 %v607_v36, %v600_v37  ;;  %v495_v29 = vand.u32 4294901760, %v494_v24  ;;  %v613_v18 = vsub.f32 %v4415_v35, %v612_v44  ;;  %v507_v55 = vand.u32 4294901760, %v4456_v53 }
  0x46   : > { %5660 = vst [vmem:[#allocation16_spill] sm:$0xff] %v4465_v1  ;;  %5661 = vst [vmem:[#allocation17_spill] sm:$0xff] %v4468_v9  ;;  %v4475_v41 = vand.u32 4294901760, %v4465_v1  ;;  %v392_v52 = vsub.f32 %v4461_v47, %v4468_v9  ;;  %v620_v34 = vsub.f32 %v4424_v10, %v619_v23  ;;  %v501_v11 = vsub.f32 %v4430_v8, %v500_v59 }
  0x47   : > { %3606 = vmatprep.subr.bf16.mxu1 %v3605_v2  ;;  %v3607_v61 = vpack.c.bf16 %v495_v29, %v488_v7  ;;  %v614_v37 = vand.u32 4294901760, %v613_v18  ;;  %v508_v9 = vsub.f32 %v4456_v53, %v507_v55  ;;  %v3615_v7 = vpack.c.bf16 %v4163_v21, %v4153_v15 }
  0x48   : > { %5662 = vst [vmem:[#allocation18_spill] sm:$0xff] %v4475_v41  ;;  %v386_v36 = vsub.f32 %v4465_v1, %v4475_v41  ;;  %v621_v24 = vand.u32 4294901760, %v620_v34  ;;  %v4485_v48 = vand.u32 4294901760, %v392_v52  ;;  %v502_v4 = vand.u32 4294901760, %v501_v11 }
  0x49   : > { %3608 = vmatpush3.bf16.msra.mxu1 %v3607_v61  ;;  %v3617_v29 = vpack.c.bf16 %v4176_v26, %v4174_v25  ;;  %v509_v8 = vand.u32 4294901760, %v508_v9  ;;  %v3619_v11 = vpack.c.bf16 %v4193_v38, %v4180_v28  ;;  %v3621_v18 = vpack.c.bf16 %v4203_v43, %v4197_v40 }
  0x4a   : > { %5663 = vst [vmem:[#allocation19_spill] sm:$0xff] %v4485_v48  ;;  %v4488_v47 = vand.u32 4294901760, %v386_v36  ;;  %v3609_v2 = vpack.c.bf16 %v621_v24, %v614_v37  ;;  %v5665_v34 = vand.u32 4294901760, %v4183_v31  ;;  %v5666_v61 = vand.u32 4294901760, %v4185_v32 }
  0x4b   : > { %v3611_v52 = vpack.c.bf16 %v509_v8, %v502_v4  ;;  %v5667_v9 = vand.u32 4294901760, %v4153_v15  ;;  %v5668_v37 = vand.u32 4294901760, %v4163_v21  ;;  %v5669_v8 = vand.u32 4294901760, %v4174_v25 }
  0x4c   : > { %5664 = vst [vmem:[#allocation20_spill] sm:$0xff] %v4488_v47  ;;  %388 = vmatprep.mubr.f32.mxu0 %v4488_v47  ;;  %3610 = vmatprep.subr.bf16.mxu1 %v3609_v2  ;;  %v4504_v36 = vpack.c.bf16 %v5666_v61, %v5665_v34  ;;  %v5670_v24 = vand.u32 4294901760, %v4176_v26  ;;  %v5671_v31 = vand.u32 4294901760, %v4180_v28  ;;  %v5672_v32 = vand.u32 4294901760, %v4193_v38 }
  0x4d   : > { %394 = vmatmul.mubr.f32.vlgmr.msra.gmra.mrb[0].mxu0 %v4485_v48  ;;  %v4511_v4 = vpack.c.bf16 %v5668_v37, %v5667_v9  ;;  %3612 = vmatpush3.bf16.msra.mxu1 %v3611_v52  ;;  %v5673_v15 = vand.u32 4294901760, %v4197_v40  ;;  %v5674_v21 = vand.u32 4294901760, %v4203_v43  ;;  %v5675_v25 = vand.u32 4294901760, %v4208_v46  ;;  %v4786_v48 = vld [vmem:[%s5547_s4 + $0xc8] sm:$0xff] }
  0x4e   : > { %3616 = vmatpush3.bf16.msra.mxu0 %v3615_v7  ;;  %761 = vmatprep.mubr.f32.mxu0 %v4465_v1  ;;  %v4517_v2 = vpack.c.bf16 %v5670_v24, %v5669_v8  ;;  %v4523_v34 = vpack.c.bf16 %v5672_v32, %v5671_v31  ;;  %v5676_v26 = vand.u32 4294901760, %v4232_v58  ;;  %v5677_v28 = vand.u32 4294901760, %v4236_v63  ;;  %5718 = vst [vmem:[#allocation27_spill] sm:$0xff] %v4786_v48 }
  0x4f   : > { %3618 = vmatprep.subr.bf16.mxu0 %v3617_v29  ;;  %v4529_v7 = vpack.c.bf16 %v5674_v21, %v5673_v15  ;;  %v5678_v38 = vand.u32 4294901760, %v4257_v12  ;;  %3646 = vmatprep.subr.bf16.mxu1 %v4151_v14  ;;  %v5679_v40 = vand.u32 4294901760, %v4261_v17  ;;  %v5680_v43 = vand.u32 4294901760, %v4275_v42 }
  0x50   : > { %v4535_v61 = vpack.c.bf16 %v5676_v26, %v5675_v25  ;;  %v5681_v52 = vand.u32 4294901760, %v4279_v50  ;;  %v5682_v37 = vand.u32 4294901760, %v4294_v60  ;;  %v5683_v24 = vand.u32 4294901760, %v4303_v5  ;;  %626 = vmatmul.mubr.f32.vlgmr.msra.gmra.mrb[0].mxu1 %v4444_v56 }
  0x51   : > { %v4541_v9 = vpack.c.bf16 %v5678_v38, %v5677_v28  ;;  %v4548_v29 = vpack.c.bf16 %v5680_v43, %v5679_v40  ;;  %v5684_v31 = vand.u32 4294901760, %v4318_v30  ;;  %v5685_v15 = vand.u32 4294901760, %v4322_v51  ;;  %3648 = vmatpush3.bf16.msra.mxu1 %v4161_v20  ;;  %868 = vmatprep.mubr.f32.mxu1 %v4475_v41 }
  0x52   : > { %v4554_v8 = vpack.c.bf16 %v5682_v37, %v5681_v52  ;;  %v5686_v21 = vand.u32 4294901760, %v4337_v3  ;;  %v5687_v26 = vand.u32 4294901760, %v4346_v0  ;;  %v5688_v28 = vand.u32 4294901760, %v4365_v6  ;;  %3620 = vmatpush3.bf16.msra.mxu0 %v3619_v11  ;;  %3650 = vmatprep.subr.bf16.mxu1 %v4165_v22 }
  0x53   : > { %v4560_v32 = vpack.c.bf16 %v5684_v31, %v5683_v24  ;;  %v5689_v40 = vand.u32 4294901760, %v4369_v33  ;;  %v5690_v43 = vand.u32 4294901760, %v4385_v57  ;;  %v5691_v37 = vand.u32 4294901760, %v4394_v54  ;;  %3622 = vmatprep.subr.bf16.mxu0 %v3621_v18  ;;  %v4664_v18 = vld [vmem:[%s5547_s4 + $0x18] sm:$0xff] }
  0x54   : > { %v4566_v25 = vpack.c.bf16 %v5686_v21, %v5685_v15  ;;  %v4572_v38 = vpack.c.bf16 %v5688_v28, %v5687_v26  ;;  %v4584_v31 = vpack.c.bf16 %v619_v23, %v612_v44  ;;  %v3623_v15 = vpack.c.bf16 %v4232_v58, %v4208_v46  ;;  %v5699_v28 = vld [vmem:[#allocation9_spill] sm:$0xff] }
  0x55   : > { %v4578_v52 = vpack.c.bf16 %v5690_v43, %v5689_v40  ;;  %v4582_v24 = vpack.c.bf16 %v493_v19, %v5691_v37  ;;  %v4589_v21 = vpack.c.bf16 %v507_v55, %v500_v59  ;;  %v3625_v26 = vpack.c.bf16 %v4257_v12, %v4236_v63  ;;  %3652 = vmatpush3.bf16.msra.mxu1 %v4178_v27  ;;  %v4648_v55 = vld [vmem:[%s5547_s4 + $0x98] sm:$0xff]  ;;  %v4658_v59 = vld [vmem:[%s5547_s4 + $0x10] sm:$0xff]  ;;  %v4673_v37 = vld [vmem:[%s5547_s4 + $0xa0] sm:$0xff] }
  0x56   : > { %3624 = vmatpush3.bf16.msra.mxu0 %v3623_v15  ;;  %v3627_v19 = vpack.c.bf16 %v4275_v42, %v4261_v17  ;;  %v3629_v46 = vpack.c.bf16 %v4294_v60, %v4279_v50  ;;  %3654 = vmatprep.subr.bf16.mxu1 %v4195_v39  ;;  %v3631_v58 = vpack.c.bf16 %v4318_v30, %v4303_v5  ;;  %v1165_v50 = vld [vmem:[%s5547_s4 + $0x80] sm:$0xff]  ;;  %v1166_v60 = vld [vmem:[%s5547_s4 + $0x88] sm:$0xff]  ;;  %v5693_v5 = vld [vmem:[#allocation6_spill] sm:$0xff]  ;;  %v5601_v43 = vand.u32 4294901760, %v4648_v55 }
  0x57   : > { %3626 = vmatprep.subr.bf16.mxu0 %v3625_v26  ;;  %v3633_v63 = vpack.c.bf16 %v4337_v3, %v4322_v51  ;;  %v3635_v12 = vpack.c.bf16 %v4365_v6, %v4346_v0  ;;  %v3637_v17 = vpack.c.bf16 %v4385_v57, %v4369_v33  ;;  %v3639_v42 = vpack.c.bf16 %v4411_v13, %v4394_v54  ;;  %v5692_v0 = vld [vmem:[#allocation5_spill] sm:$0xff]  ;;  %v5694_v54 = vld [vmem:[#allocation12_spill] sm:$0xff]  ;;  %v4631_v6 = vld [vmem:[%s5547_s4] sm:$0xff] }
  0x58   : > { %v3641_v33 = vpack.c.bf16 %v4424_v10, %v4415_v35  ;;  %v1230_v30 = vand.u32 4294901760, %v1165_v50  ;;  %v1233_v51 = vand.u32 4294901760, %v1166_v60  ;;  %v3643_v3 = vpack.c.bf16 %v4456_v53, %v5694_v54  ;;  %v5695_v57 = vld [vmem:[#allocation7_spill] sm:$0xff]  ;;  %v4637_v35 = vld [vmem:[%s5547_s4 + $0x8] sm:$0xff]  ;;  %v4643_v10 = vld [vmem:[%s5547_s4 + $0x90] sm:$0xff]  ;;  %5697 = vst [vmem:[#allocation5_spill] sm:$0xff] %v4658_v59 }
  0x59   : > { %3656 = vmatpush3.bf16.msra.mxu1 %v4206_v45  ;;  %v5696_v13 = vld [vmem:[#allocation8_spill] sm:$0xff]  ;;  %v5598_v23 = vand.u32 4294901760, %v4631_v6  ;;  %v5599_v11 = vand.u32 4294901760, %v4637_v35  ;;  %5698 = vst [vmem:[#allocation6_spill] sm:$0xff] %v4664_v18  ;;  %v5600_v40 = vand.u32 4294901760, %v4643_v10  ;;  %5700 = vst [vmem:[#allocation12_spill] sm:$0xff] %v4673_v37 }
  0x5a   : > { %3628 = vmatpush3.bf16.msra.mxu0 %v3627_v19  ;;  %3658 = vmatprep.subr.bf16.mxu1 %v4234_v62  ;;  %v4650_v53 = vsub.f32 %v1165_v50, %v1230_v30  ;;  %v4652_v44 = vsub.f32 %v1166_v60, %v1233_v51  ;;  %v5701_v15 = vld [vmem:[#allocation10_spill] sm:$0xff]  ;;  %v5602_v26 = vand.u32 4294901760, %v4658_v59  ;;  %v4680_v19 = vld [vmem:[%s5547_s4 + $0xa8] sm:$0xff]  ;;  %v5707_v54 = vld [vmem:[#allocation11_spill] sm:$0xff]  ;;  %vm2049_vm2 = vcmask 1043456  }
  0x5b   : > { %3630 = vmatprep.subr.bf16.mxu0 %v3629_v46  ;;  %5702 = vst [vmem:[#allocation7_spill] sm:$0xff] %v4680_v19  ;;  %v5704_v46 = vld [vmem:[#allocation15_spill] sm:$0xff]  ;;  %v5706_v50 = vld [vmem:[#allocation14_spill] sm:$0xff]  ;;  %v4706_v60 = vsub.f32 %v4637_v35, %v5599_v11  ;;  %vm2958_vm3 = vcmask 523264  }
  0x5d   : > { %3660 = vmatpush3.bf16.msra.mxu1 %v4259_v16 }
  0x5e   : > { %3632 = vmatpush3.bf16.msra.mxu0 %v3631_v58  ;;  %3662 = vmatprep.subr.bf16.mxu1 %v4277_v49  ;;  %v4691_v58 = vsub.f32 %v4631_v6, %v5598_v23 }
  0x5f   : > { %3634 = vmatprep.subr.bf16.mxu0 %v3633_v63  ;;  %v5603_v63 = vand.u32 4294901760, %v4664_v18 }
  0x61   : > { %3664 = vmatpush3.bf16.msra.mxu1 %v5692_v0  ;;  %v4745_v23 = vsub.f32 %v4664_v18, %v5603_v63  ;;  %v4766_v63 = vld [vmem:[%s5547_s4 + $0x38] sm:$0xff]  ;;  %v4919_v18 = vld [vmem:[%s5547_s4 + $0x60] sm:$0xff] }
  0x62   : > { %3636 = vmatpush3.bf16.msra.mxu0 %v3635_v12  ;;  %3666 = vmatprep.subr.bf16.mxu1 %v5693_v5  ;;  %v5604_v12 = vand.u32 4294901760, %v4650_v53  ;;  %5714 = vst [vmem:[#allocation25_spill] sm:$0xff] %v4766_v63  ;;  %5742 = vst [vmem:[#allocation38_spill] sm:$0xff] %v4919_v18 }
  0x63   : > { %3638 = vmatprep.subr.bf16.mxu0 %v3637_v17 }
  0x64   : > { %v4750_v17 = vsub.f32 %v4650_v53, %v5604_v12  ;;  %v4771_v12 = vld [vmem:[%s5547_s4 + $0xc0] sm:$0xff] }
  0x65   : > { %3668 = vmatpush3.bf16.msra.mxu1 %v5695_v57  ;;  %5715 = vst [vmem:[#allocation26_spill] sm:$0xff] %v4771_v12 }
  0x66   : > { %3640 = vmatpush3.bf16.msra.mxu0 %v3639_v42  ;;  %3670 = vmatprep.subr.bf16.mxu1 %v5696_v13  ;;  %v4699_v42 = vld [vmem:[%s5547_s4 + $0x28] sm:$0xff] }
  0x67   : > { %3642 = vmatprep.subr.bf16.mxu0 %v3641_v33  ;;  %5705 = vst [vmem:[#allocation9_spill] sm:$0xff] %v4699_v42  ;;  %v4731_v33 = vld [vmem:[%s5547_s4 + $0xb8] sm:$0xff] }
  0x68   : > { %5709 = vst [vmem:[#allocation21_spill] sm:$0xff] %v4731_v33 }
  0x69   : > { %3672 = vmatpush3.bf16.msra.mxu1 %v5699_v28 }
  0x6a   : > { %3644 = vmatpush3.bf16.msra.mxu0 %v3643_v3  ;;  %3674 = vmatprep.subr.bf16.mxu1 %v5701_v15  ;;  %v4714_v3 = vsub.f32 %v4643_v10, %v5600_v40  ;;  %v4734_v40 = vpack.c.bf16 %v1233_v51, %v1230_v30  ;;  %v5717_v51 = vand.u32 4294901760, %v4673_v37 }
  0x6b   : > { %3678 = vmatprep.subr.bf16.mxu0 %v4504_v36  ;;  %v4685_v36 = vld [vmem:[%s5547_s4 + $0x20] sm:$0xff] }
  0x6c   : > { %5703 = vst [vmem:[#allocation8_spill] sm:$0xff] %v4685_v36  ;;  %5710 = vst [vmem:[#allocation22_spill] sm:$0xff] %v4734_v40  ;;  %v4778_v11 = vsub.f32 %v4673_v37, %v5717_v51 }
  0x6d   : > { %764 = vmatmul.mubr.f32.vlgmr.msra.gmra.mrb[2].mxu0 %v5704_v46  ;;  %3676 = vmatpush3.bf16.msra.mxu1 %v5707_v54  ;;  %v5721_v46 = vand.u32 4294901760, %v4685_v36  ;;  %v5737_v54 = vand.u32 4294901760, %v4771_v12 }
  0x6e   : > { %3680 = vmatpush3.bf16.msra.mxu0 %v4511_v4  ;;  %1038 = vmatprep.mubr.f32.mxu0 %v5706_v50  ;;  %v4719_v4 = vsub.f32 %v4648_v55, %v5601_v43  ;;  %v4739_v43 = vsub.f32 %v4658_v59, %v5602_v26  ;;  %v4761_v26 = vld [vmem:[%s5547_s4 + $0x30] sm:$0xff]  ;;  %v4924_v59 = vld [vmem:[%s5547_s4 + $0x68] sm:$0xff] }
  0x6f   : > { %3682 = vmatprep.subr.bf16.mxu0 %v4517_v2  ;;  %v4726_v2 = vld [vmem:[%s5547_s4 + $0xb0] sm:$0xff]  ;;  %3710 = vmatprep.subr.bf16.mxu1 %v4151_v14  ;;  %v5711_v14 = vand.u32 4294901760, %v4652_v44  ;;  %5713 = vst [vmem:[#allocation24_spill] sm:$0xff] %v4761_v26  ;;  %v4798_v41 = vsub.f32 %v4685_v36, %v5721_v46  ;;  %v4820_v36 = vld [vmem:[%s5547_s4 + $0x48] sm:$0xff]  ;;  %v4891_v47 = vsub.f32 %v4771_v12, %v5737_v54 }
  0x70   : > { %5708 = vst [vmem:[#allocation10_spill] sm:$0xff] %v4726_v2  ;;  %5726 = vst [vmem:[#allocation32_spill] sm:$0xff] %v4820_v36  ;;  %v5733_v46 = vand.u32 4294901760, %v4719_v4 }
  0x71   : > { %v4755_v30 = vsub.f32 %v4652_v44, %v5711_v14  ;;  %v5716_v14 = vld [vmem:[#allocation17_spill] sm:$0xff]  ;;  %5722 = vst [vmem:[#allocation29_spill] sm:$0xff] %v4798_v41 }
  0x72   : > { %3684 = vmatpush3.bf16.msra.mxu0 %v4523_v34  ;;  %872 = vmatmul.mubr.f32.vlgmr.msra.gmra.mrb[2].mxu1 %v5716_v14  ;;  %v5719_v34 = vand.u32 4294901760, %v4680_v19  ;;  %v5728_v14 = vand.u32 4294901760, %v4706_v60 }
  0x73   : > { %5712 = vst [vmem:[#allocation23_spill] sm:$0xff] %v4755_v30  ;;  %3686 = vmatprep.subr.bf16.mxu0 %v4529_v7  ;;  %3712 = vmatpush3.bf16.msra.mxu1 %v4161_v20  ;;  %v4805_v7 = vld [vmem:[%s5547_s4 + $0x40] sm:$0xff]  ;;  %v5724_v20 = vand.u32 4294901760, %v4699_v42 }
  0x74   : > { %v4793_v51 = vsub.f32 %v4680_v19, %v5719_v34  ;;  %5723 = vst [vmem:[#allocation30_spill] sm:$0xff] %v4805_v7  ;;  %3714 = vmatprep.subr.bf16.mxu1 %v4165_v22  ;;  %1142 = vmatprep.mubr.f32.mxu1 %v5706_v50  ;;  %v5727_v19 = vand.u32 4294901760, %v4691_v58  ;;  %v4834_v1 = vsub.f32 %v4706_v60, %v5728_v14  ;;  %v5730_v50 = vand.u32 4294901760, %v4731_v33 }
  0x75   : > { %v4812_v34 = vsub.f32 %v4699_v42, %v5724_v20  ;;  %v5729_v42 = vand.u32 4294901760, %v4726_v2  ;;  %v5731_v14 = vand.u32 4294901760, %v4714_v3 }
  0x76   : > { %5720 = vst [vmem:[#allocation28_spill] sm:$0xff] %v4793_v51  ;;  %v4827_v20 = vsub.f32 %v4691_v58, %v5727_v19  ;;  %3688 = vmatpush3.bf16.msra.mxu0 %v4535_v61  ;;  %v4844_v37 = vsub.f32 %v4731_v33, %v5730_v50  ;;  %v4850_v61 = vld [vmem:[%s5547_s4 + $0xd0] sm:$0xff]  ;;  %v4862_v50 = vsub.f32 %v4719_v4, %v5733_v46  ;;  %v5736_v19 = vand.u32 4294901760, %v4766_v63 }
  0x77   : > { %5725 = vst [vmem:[#allocation31_spill] sm:$0xff] %v4812_v34  ;;  %v4839_v22 = vsub.f32 %v4726_v2, %v5729_v42  ;;  %3690 = vmatprep.subr.bf16.mxu0 %v4541_v9  ;;  %3716 = vmatpush3.bf16.msra.mxu1 %v4178_v27  ;;  %v4857_v42 = vsub.f32 %v4714_v3, %v5731_v14  ;;  %v4869_v9 = vld [vmem:[%s5547_s4 + $0xd8] sm:$0xff]  ;;  %v4874_v27 = vld [vmem:[%s5547_s4 + $0x50] sm:$0xff]  ;;  %v5735_v14 = vand.u32 4294901760, %v4761_v26  ;;  %v5741_v2 = vand.u32 4294901760, %v4786_v48 }
  0x78   : > { %5734 = vst [vmem:[#allocation34_spill] sm:$0xff] %v4862_v50  ;;  %3718 = vmatprep.subr.bf16.mxu1 %v4195_v39  ;;  %v4885_v33 = vsub.f32 %v4766_v63, %v5736_v19  ;;  %v4896_v39 = vld [vmem:[%s5547_s4 + $0x58] sm:$0xff]  ;;  %v4906_v19 = vld [vmem:[%s5547_s4 + $0xe8] sm:$0xff]  ;;  %v5743_v63 = vand.u32 4294901760, %v4805_v7 }
  0x79   : > { %5732 = vst [vmem:[#allocation33_spill] sm:$0xff] %v4857_v42  ;;  %v4880_v46 = vsub.f32 %v4761_v26, %v5735_v14  ;;  %5738 = vst [vmem:[#allocation35_spill] sm:$0xff] %v4896_v39  ;;  %v4901_v14 = vld [vmem:[%s5547_s4 + $0xe0] sm:$0xff]  ;;  %v4911_v54 = vsub.f32 %v4786_v48, %v5741_v2  ;;  %v4929_v2 = vld [vmem:[%s5547_s4 + $0xf0] sm:$0xff]  ;;  %v5748_v26 = vand.u32 4294901760, %v4850_v61 }
  0x7a   : > { %5739 = vst [vmem:[#allocation36_spill] sm:$0xff] %v4901_v14  ;;  %5740 = vst [vmem:[#allocation37_spill] sm:$0xff] %v4906_v19  ;;  %3692 = vmatpush3.bf16.msra.mxu0 %v4548_v29  ;;  %v4935_v12 = vsub.f32 %v4805_v7, %v5743_v63  ;;  %v4943_v50 = vld [vmem:[%s5547_s4 + $0xf8] sm:$0xff]  ;;  %v4948_v29 = vld [vmem:[%s5547_s4 + $0x70] sm:$0xff]  ;;  %v5745_v63 = vand.u32 4294901760, %v4820_v36  ;;  %v5752_v7 = vand.u32 4294901760, %v4901_v14 }
  0x7b   : > { %5744 = vst [vmem:[#allocation39_spill] sm:$0xff] %v4943_v50  ;;  %3694 = vmatprep.subr.bf16.mxu0 %v4554_v8  ;;  %3720 = vmatpush3.bf16.msra.mxu1 %v4206_v45  ;;  %v4973_v56 = vsub.f32 %v4850_v61, %v5748_v26  ;;  %v5749_v45 = vand.u32 4294901760, %v4869_v9 }
  0x7c   : > { %v4955_v48 = vsub.f32 %v4820_v36, %v5745_v63  ;;  %3722 = vmatprep.subr.bf16.mxu1 %v4234_v62  ;;  %v4968_v63 = vld [vmem:[%s5547_s4 + $0x78] sm:$0xff]  ;;  %v5750_v62 = vand.u32 4294901760, %v4874_v27  ;;  %v5002_v36 = vsub.f32 %v4901_v14, %v5752_v7  ;;  %v5756_v7 = vand.u32 4294901760, %v4929_v2 }
  0x7d   : > { %5747 = vst [vmem:[#allocation41_spill] sm:$0xff] %v4968_v63  ;;  %v4982_v8 = vsub.f32 %v4869_v9, %v5749_v45 }
  0x7e   : > { %5746 = vst [vmem:[#allocation40_spill] sm:$0xff] %v4955_v48  ;;  %3696 = vmatpush3.bf16.msra.mxu0 %v4560_v32  ;;  %v4992_v30 = vsub.f32 %v4874_v27, %v5750_v62  ;;  %v5751_v32 = vand.u32 4294901760, %v4896_v39  ;;  %v5754_v62 = vand.u32 4294901760, %v4919_v18  ;;  %v5024_v26 = vsub.f32 %v4929_v2, %v5756_v7 }
  0x7f   : > { %3698 = vmatprep.subr.bf16.mxu0 %v4566_v25  ;;  %3724 = vmatpush3.bf16.msra.mxu1 %v4259_v16  ;;  %v5753_v16 = vand.u32 4294901760, %v4906_v19  ;;  %v5767_v7 = vand.u32 4294901760, %v4719_v4 }
  0x80   : > { %v4997_v45 = vsub.f32 %v4896_v39, %v5751_v32  ;;  %3726 = vmatprep.subr.bf16.mxu1 %v4277_v49  ;;  %v5014_v42 = vsub.f32 %v4919_v18, %v5754_v62  ;;  %v5755_v32 = vand.u32 4294901760, %v4924_v59  ;;  %v5758_v62 = vand.u32 4294901760, %v4948_v29 }
  0x81   : > { %v5009_v25 = vsub.f32 %v4906_v19, %v5753_v16  ;;  %v5757_v19 = vand.u32 4294901760, %v4943_v50  ;;  %v5764_v49 = vand.u32 4294901760, %v4706_v60  ;;  %v5770_v16 = vand.u32 4294901760, %v4745_v23 }
  0x82   : > { %v5019_v39 = vsub.f32 %v4924_v59, %v5755_v32  ;;  %v5036_v18 = vsub.f32 %v4948_v29, %v5758_v62  ;;  %3700 = vmatpush3.bf16.msra.mxu0 %v4572_v38  ;;  %v5760_v62 = vand.u32 4294901760, %v4650_v53  ;;  %v5761_v38 = vand.u32 4294901760, %v4652_v44 }
  0x83   : > { %v5031_v14 = vsub.f32 %v4943_v50, %v5757_v19  ;;  %3702 = vmatprep.subr.bf16.mxu0 %v4578_v52  ;;  %3728 = vmatpush3.bf16.msra.mxu1 %v5692_v0  ;;  %v5759_v19 = vand.u32 4294901760, %v4968_v63  ;;  %v5766_v0 = vand.u32 4294901760, %v4714_v3 }
  0x84   : > { %3730 = vmatprep.subr.bf16.mxu1 %v5693_v5  ;;  %v5763_v5 = vand.u32 4294901760, %v4691_v58 }
  0x85   : > { %v5048_v50 = vsub.f32 %v4968_v63, %v5759_v19  ;;  %v5064_v63 = vpack.c.bf16 %v5761_v38, %v5760_v62  ;;  %v5077_v52 = vpack.c.bf16 %v5767_v7, %v5766_v0  ;;  %v5769_v19 = vand.u32 4294901760, %v4739_v43 }
  0x86   : > { %v5070_v32 = vpack.c.bf16 %v5764_v49, %v5763_v5  ;;  %3704 = vmatpush3.bf16.msra.mxu0 %v4582_v24  ;;  %v5772_v38 = vand.u32 4294901760, %v4778_v11  ;;  %v5775_v24 = vand.u32 4294901760, %v4798_v41  ;;  %v5776_v5 = vand.u32 4294901760, %v4812_v34 }
  0x87   : > { %5762 = vst [vmem:[#allocation42_spill] sm:$0xff] %v5064_v63  ;;  %5768 = vst [vmem:[#allocation44_spill] sm:$0xff] %v5077_v52  ;;  %v5083_v62 = vpack.c.bf16 %v5770_v16, %v5769_v19  ;;  %v5773_v63 = vand.u32 4294901760, %v4793_v51  ;;  %3706 = vmatprep.subr.bf16.mxu0 %v4584_v31  ;;  %3732 = vmatpush3.bf16.msra.mxu1 %v5695_v57  ;;  %v5778_v16 = vand.u32 4294901760, %v4839_v22  ;;  %v5779_v0 = vand.u32 4294901760, %v4844_v37 }
  0x88   : > { %5765 = vst [vmem:[#allocation43_spill] sm:$0xff] %v5070_v32  ;;  %v5095_v32 = vpack.c.bf16 %v5776_v5, %v5775_v24  ;;  %v5784_v24 = vand.u32 4294901760, %v4891_v47  ;;  %v5785_v31 = vand.u32 4294901760, %v4911_v54  ;;  %3734 = vmatprep.subr.bf16.mxu1 %v5696_v13  ;;  %v5787_v57 = vand.u32 4294901760, %v4935_v12 }
  0x89   : > { %5771 = vst [vmem:[#allocation45_spill] sm:$0xff] %v5083_v62  ;;  %v5089_v49 = vpack.c.bf16 %v5773_v63, %v5772_v38  ;;  %v5104_v19 = vpack.c.bf16 %v5779_v0, %v5778_v16  ;;  %v5781_v63 = vand.u32 4294901760, %v4880_v46  ;;  %v5782_v38 = vand.u32 4294901760, %v4885_v33 }
  0x8a   : > { %5777 = vst [vmem:[#allocation47_spill] sm:$0xff] %v5095_v32  ;;  %v5116_v5 = vpack.c.bf16 %v5785_v31, %v5784_v24  ;;  %v5788_v7 = vand.u32 4294901760, %v4955_v48  ;;  %v5790_v0 = vand.u32 4294901760, %v4973_v56  ;;  %v5796_v13 = vand.u32 4294901760, %v5002_v36  ;;  %3708 = vmatpush3.bf16.msra.mxu0 %v4589_v21 }
  0x8b   : > { %5774 = vst [vmem:[#allocation46_spill] sm:$0xff] %v5089_v49  ;;  %5780 = vst [vmem:[#allocation48_spill] sm:$0xff] %v5104_v19  ;;  %v5110_v49 = vpack.c.bf16 %v5782_v38, %v5781_v63  ;;  %v5791_v19 = vand.u32 4294901760, %v4982_v8  ;;  %v5793_v38 = vand.u32 4294901760, %v4992_v30  ;;  %v5797_v31 = vand.u32 4294901760, %v5009_v25  ;;  %3742 = vmatprep.subr.bf16.mxu0 %v4734_v40  ;;  %3736 = vmatpush3.bf16.msra.mxu1 %v5699_v28  ;;  %v5821_v28 = vld [vmem:[#allocation33_spill] sm:$0xff] }
  0x8c   : > { %5786 = vst [vmem:[#allocation50_spill] sm:$0xff] %v5116_v5  ;;  %v5123_v16 = vpack.c.bf16 %v5788_v7, %v5787_v57  ;;  %v5799_v7 = vand.u32 4294901760, %v5014_v42  ;;  %v5800_v57 = vand.u32 4294901760, %v5019_v39  ;;  %3738 = vmatprep.subr.bf16.mxu1 %v5701_v15 }
  0x8d   : > { %5783 = vst [vmem:[#allocation49_spill] sm:$0xff] %v5110_v49  ;;  %v5129_v63 = vpack.c.bf16 %v5791_v19, %v5790_v0  ;;  %v5794_v49 = vand.u32 4294901760, %v4997_v45  ;;  %v5141_v5 = vpack.c.bf16 %v5797_v31, %v5796_v13  ;;  %v5802_v19 = vand.u32 4294901760, %v5024_v26 }
  0x8e   : > { %5789 = vst [vmem:[#allocation51_spill] sm:$0xff] %v5123_v16  ;;  %v5147_v16 = vpack.c.bf16 %v5800_v57, %v5799_v7  ;;  %v5803_v0 = vand.u32 4294901760, %v5031_v14  ;;  %v5808_v13 = vand.u32 4294901760, %v4631_v6  ;;  %v5809_v31 = vand.u32 4294901760, %v4637_v35 }
  0x8f   : > { %5792 = vst [vmem:[#allocation52_spill] sm:$0xff] %v5129_v63  ;;  %v5135_v24 = vpack.c.bf16 %v5794_v49, %v5793_v38  ;;  %5798 = vst [vmem:[#allocation54_spill] sm:$0xff] %v5141_v5  ;;  %v5805_v49 = vand.u32 4294901760, %v5036_v18  ;;  %v5806_v38 = vand.u32 4294901760, %v5048_v50  ;;  %v5811_v57 = vand.u32 4294901760, %v4643_v10  ;;  %v5824_v5 = vld [vmem:[#allocation5_spill] sm:$0xff] }
  0x90   : > { %5801 = vst [vmem:[#allocation55_spill] sm:$0xff] %v5147_v16  ;;  %v5153_v63 = vpack.c.bf16 %v5803_v0, %v5802_v19  ;;  %v5166_v7 = vpack.c.bf16 %v5809_v31, %v5808_v13  ;;  %v5812_v16 = vand.u32 4294901760, %v4648_v55  ;;  %v5814_v0 = vand.u32 4294901760, %v4739_v43  ;;  %v5819_v31 = vld [vmem:[#allocation23_spill] sm:$0xff] }
  0x91   : > { %5795 = vst [vmem:[#allocation53_spill] sm:$0xff] %v5135_v24  ;;  %v5159_v24 = vpack.c.bf16 %v5806_v38, %v5805_v49  ;;  %v5815_v49 = vand.u32 4294901760, %v4745_v23  ;;  %v1298_v6 = vand.u32 4294901760, %v4827_v20  ;;  %v1305_v35 = vand.u32 4294901760, %v4834_v1  ;;  %v5822_v20 = vld [vmem:[#allocation34_spill] sm:$0xff]  ;;  %v5823_v1 = vld [vmem:[#allocation13_spill] sm:$0xff] }
  0x92   : > { %5804 = vst [vmem:[#allocation56_spill] sm:$0xff] %v5153_v63  ;;  %5810 = vst [vmem:[#allocation58_spill] sm:$0xff] %v5166_v7  ;;  %v5172_v19 = vpack.c.bf16 %v5812_v16, %v5811_v57  ;;  %v1311_v63 = vsub.f32 %v4739_v43, %v5814_v0  ;;  %v5816_v10 = vand.u32 4294901760, %v4778_v11  ;;  %v5817_v16 = vand.u32 4294901760, %v4793_v51  ;;  %1040 = vmatmul.mubr.f32.vlgmr.msra.gmra.mrb[4].mxu0 %v5823_v1 }
  0x93   : > { %5807 = vst [vmem:[#allocation57_spill] sm:$0xff] %v5159_v24  ;;  %v1318_v21 = vsub.f32 %v4745_v23, %v5815_v49  ;;  %v5818_v13 = vand.u32 4294901760, %v4750_v17  ;;  %v5820_v57 = vand.u32 4294901760, %v5819_v31  ;;  %v1424_v49 = vand.u32 4294901760, %v5821_v28  ;;  %3744 = vmatpush3.bf16.msra.mxu0 %v5166_v7  ;;  %v5830_v28 = vld [vmem:[#allocation20_spill] sm:$0xff] }
  0x94   : > { %5813 = vst [vmem:[#allocation59_spill] sm:$0xff] %v5172_v19  ;;  %v1437_v55 = vsub.f32 %v4778_v11, %v5816_v10  ;;  %v1444_v38 = vsub.f32 %v4793_v51, %v5817_v16  ;;  %v1431_v24 = vand.u32 4294901760, %v5822_v20  ;;  %v5825_v32 = vand.u32 4294901760, %v5824_v5  ;;  %v5826_v10 = vld [vmem:[#allocation6_spill] sm:$0xff]  ;;  %1282 = vmatprep.mubr.f32.mxu0 %v5830_v28  ;;  %3746 = vmatprep.subr.bf16.mxu0 %v5172_v19  ;;  %v5831_v5 = vld [vmem:[#allocation11_spill] sm:$0xff] }
  0x95   : > { %v3773_v0 = vpack.c.bf16 %v5820_v57, %v5818_v13  ;;  %v5827_v62 = vand.u32 4294901760, %v5826_v10  ;;  %v1312_v15 = vand.u32 4294901760, %v1311_v63  ;;  %v1319_v16 = vand.u32 4294901760, %v1318_v21  ;;  %3740 = vmatpush3.bf16.msra.mxu1 %v5831_v5  ;;  %v5834_v20 = vld [vmem:[#allocation7_spill] sm:$0xff]  ;;  %v5838_v5 = vld [vmem:[#allocation8_spill] sm:$0xff] }
  0x96   : > { %v5828_v17 = vand.u32 4294901760, %v4798_v41  ;;  %v5829_v31 = vand.u32 4294901760, %v4812_v34  ;;  %v5835_v10 = vand.u32 4294901760, %v5834_v20  ;;  %v3775_v21 = vpack.c.bf16 %v1305_v35, %v1298_v6  ;;  %v5843_v6 = vld [vmem:[#allocation10_spill] sm:$0xff]  ;;  %v5845_v35 = vld [vmem:[#allocation21_spill] sm:$0xff] }
  0x97   : > { %v5202_v52 = vpack.c.bf16 %v5827_v62, %v5825_v32  ;;  %v5832_v32 = vld [vmem:[#allocation12_spill] sm:$0xff]  ;;  %v1438_v7 = vand.u32 4294901760, %v1437_v55  ;;  %v1445_v40 = vand.u32 4294901760, %v1444_v38  ;;  %3774 = vmatprep.subr.bf16.mxu1 %v3773_v0  ;;  %v5837_v28 = vand.u32 4294901760, %v4844_v37 }
  0x98   : > { %v1325_v13 = vsub.f32 %v4798_v41, %v5828_v17  ;;  %v1332_v57 = vsub.f32 %v4812_v34, %v5829_v31  ;;  %v5833_v62 = vand.u32 4294901760, %v5832_v32  ;;  %v3777_v17 = vpack.c.bf16 %v1431_v24, %v1424_v49  ;;  %v5840_v32 = vld [vmem:[#allocation9_spill] sm:$0xff]  ;;  %1144 = vmatmul.mubr.f32.vlgmr.msra.gmra.mrb[4].mxu1 %v5823_v1 }
  0x99   : > { %v5836_v41 = vand.u32 4294901760, %v4839_v22  ;;  %v1458_v19 = vsub.f32 %v4844_v37, %v5837_v28  ;;  %v5839_v34 = vand.u32 4294901760, %v5838_v5  ;;  %v5841_v51 = vand.u32 4294901760, %v5840_v32  ;;  %3748 = vmatpush3.bf16.msra.mxu0 %v5202_v52  ;;  %3776 = vmatpush3.bf16.msra.mxu1 %v3775_v21  ;;  %v5855_v21 = vld [vmem:[#allocation25_spill] sm:$0xff] }
  0x9a   : > { %v5218_v63 = vpack.c.bf16 %v5835_v10, %v5833_v62  ;;  %v5844_v24 = vand.u32 4294901760, %v5843_v6  ;;  %v5846_v55 = vand.u32 4294901760, %v5845_v35  ;;  %v1326_v0 = vand.u32 4294901760, %v1325_v13  ;;  %3778 = vmatprep.subr.bf16.mxu1 %v3777_v17  ;;  %v5857_v17 = vld [vmem:[#allocation26_spill] sm:$0xff] }
  0x9b   : > { %v1451_v31 = vsub.f32 %v4839_v22, %v5836_v41  ;;  %v5230_v20 = vpack.c.bf16 %v5841_v51, %v5839_v34  ;;  %v3779_v41 = vpack.c.bf16 %v1319_v16, %v1312_v15  ;;  %v1333_v49 = vand.u32 4294901760, %v1332_v57 }
  0x9c   : > { %v5238_v38 = vpack.c.bf16 %v5846_v55, %v5844_v24  ;;  %3750 = vmatprep.subr.bf16.mxu0 %v5218_v63  ;;  %v3781_v62 = vpack.c.bf16 %v1445_v40, %v1438_v7  ;;  %v5848_v51 = vand.u32 4294901760, %v4880_v46  ;;  %v5849_v10 = vand.u32 4294901760, %v4885_v33  ;;  %v5852_v40 = vld [vmem:[#allocation14_spill] sm:$0xff]  ;;  %v5853_v7 = vld [vmem:[#allocation24_spill] sm:$0xff] }
  0x9d   : > { %5842 = vst [vmem:[#allocation23_spill] sm:$0xff] %v5230_v20  ;;  %v1452_v5 = vand.u32 4294901760, %v1451_v31  ;;  %v1459_v32 = vand.u32 4294901760, %v1458_v19  ;;  %v5850_v6 = vand.u32 4294901760, %v4891_v47  ;;  %v5851_v16 = vand.u32 4294901760, %v4911_v54  ;;  %1518 = vmatprep.mubr.f32.mxu1 %v5852_v40  ;;  %3752 = vmatpush3.bf16.msra.mxu0 %v5230_v20  ;;  %v5859_v31 = vld [vmem:[#allocation27_spill] sm:$0xff] }
  0x9e   : > { %5847 = vst [vmem:[#allocation33_spill] sm:$0xff] %v5238_v38  ;;  %v1339_v34 = vsub.f32 %v4880_v46, %v5848_v51  ;;  %v1346_v28 = vsub.f32 %v4885_v33, %v5849_v10  ;;  %v5854_v57 = vand.u32 4294901760, %v5853_v7  ;;  %v5856_v24 = vand.u32 4294901760, %v5855_v21  ;;  %3754 = vmatprep.subr.bf16.mxu0 %v5238_v38  ;;  %3780 = vmatpush3.bf16.msra.mxu1 %v3779_v41 }
  0x9f   : > { %v1465_v15 = vsub.f32 %v4891_v47, %v5850_v6  ;;  %v1472_v13 = vsub.f32 %v4911_v54, %v5851_v16  ;;  %v5858_v19 = vand.u32 4294901760, %v5857_v17  ;;  %v5860_v55 = vand.u32 4294901760, %v5859_v31  ;;  %3782 = vmatprep.subr.bf16.mxu1 %v3781_v62 }
  0xa0   : > { %v5258_v35 = vpack.c.bf16 %v5856_v24, %v5854_v57  ;;  %v3783_v10 = vpack.c.bf16 %v1333_v49, %v1326_v0  ;;  %v5861_v6 = vand.u32 4294901760, %v4935_v12  ;;  %v5862_v40 = vand.u32 4294901760, %v4955_v48 }
  0xa1   : > { %v5265_v51 = vpack.c.bf16 %v5860_v55, %v5858_v19  ;;  %v1340_v57 = vand.u32 4294901760, %v1339_v34  ;;  %v1347_v21 = vand.u32 4294901760, %v1346_v28  ;;  %v5863_v24 = vand.u32 4294901760, %v4973_v56 }
  0xa2   : > { %v1353_v16 = vsub.f32 %v4935_v12, %v5861_v6  ;;  %v1360_v7 = vsub.f32 %v4955_v48, %v5862_v40  ;;  %v5864_v19 = vand.u32 4294901760, %v4982_v8  ;;  %v3785_v49 = vpack.c.bf16 %v1459_v32, %v1452_v5  ;;  %v5865_v6 = vld [vmem:[#allocation30_spill] sm:$0xff]  ;;  %v5867_v40 = vld [vmem:[#allocation32_spill] sm:$0xff]  ;;  %3756 = vmatpush3.bf16.msra.mxu0 %v5258_v35  ;;  %3784 = vmatpush3.bf16.msra.mxu1 %v3783_v10 }
  0xa3   : > { %v1479_v17 = vsub.f32 %v4973_v56, %v5863_v24  ;;  %v1466_v31 = vand.u32 4294901760, %v1465_v15  ;;  %v1473_v55 = vand.u32 4294901760, %v1472_v13  ;;  %v5866_v20 = vand.u32 4294901760, %v5865_v6  ;;  %3758 = vmatprep.subr.bf16.mxu0 %v5265_v51 }
  0xa4   : > { %v1486_v0 = vsub.f32 %v4982_v8, %v5864_v19  ;;  %v5868_v48 = vand.u32 4294901760, %v5867_v40  ;;  %v1354_v41 = vand.u32 4294901760, %v1353_v16  ;;  %v1361_v34 = vand.u32 4294901760, %v1360_v7  ;;  %3786 = vmatprep.subr.bf16.mxu1 %v3785_v49 }
  0xa5   : > { %v5869_v28 = vand.u32 4294901760, %v4992_v30  ;;  %v5870_v19 = vand.u32 4294901760, %v4997_v45  ;;  %v5871_v5 = vand.u32 4294901760, %v4850_v61  ;;  %v3787_v32 = vpack.c.bf16 %v1347_v21, %v1340_v57  ;;  %v5876_v61 = vld [vmem:[#allocation35_spill] sm:$0xff]  ;;  %v5878_v57 = vld [vmem:[#allocation36_spill] sm:$0xff] }
  0xa6   : > { %v5284_v38 = vpack.c.bf16 %v5868_v48, %v5866_v20  ;;  %v5872_v48 = vand.u32 4294901760, %v4869_v9  ;;  %v1480_v15 = vand.u32 4294901760, %v1479_v17  ;;  %v1487_v13 = vand.u32 4294901760, %v1486_v0  ;;  %v5880_v17 = vld [vmem:[#allocation37_spill] sm:$0xff] }
  0xa7   : > { %v1367_v24 = vsub.f32 %v4992_v30, %v5869_v28  ;;  %v1374_v62 = vsub.f32 %v4997_v45, %v5870_v19  ;;  %v3789_v16 = vpack.c.bf16 %v1473_v55, %v1466_v31  ;;  %v5873_v7 = vand.u32 4294901760, %v5002_v36  ;;  %3788 = vmatpush3.bf16.msra.mxu1 %v3787_v32 }
  0xa8   : > { %v5298_v20 = vpack.c.bf16 %v5872_v48, %v5871_v5  ;;  %v5874_v40 = vand.u32 4294901760, %v5009_v25  ;;  %v5875_v10 = vand.u32 4294901760, %v4874_v27  ;;  %v5877_v19 = vand.u32 4294901760, %v5876_v61  ;;  %3760 = vmatpush3.bf16.msra.mxu0 %v5284_v38 }
  0xa9   : > { %v1493_v6 = vsub.f32 %v5002_v36, %v5873_v7  ;;  %v5879_v21 = vand.u32 4294901760, %v5878_v57  ;;  %v5881_v0 = vand.u32 4294901760, %v5880_v17  ;;  %v3791_v31 = vpack.c.bf16 %v1361_v34, %v1354_v41  ;;  %3790 = vmatprep.subr.bf16.mxu1 %v3789_v16 }
  0xaa   : > { %v1500_v28 = vsub.f32 %v5009_v25, %v5874_v40  ;;  %v5310_v9 = vpack.c.bf16 %v5877_v19, %v5875_v10  ;;  %v1368_v55 = vand.u32 4294901760, %v1367_v24  ;;  %v1375_v5 = vand.u32 4294901760, %v1374_v62  ;;  %3762 = vmatprep.subr.bf16.mxu0 %v5298_v20  ;;  %v5886_v62 = vld [vmem:[#allocation38_spill] sm:$0xff] }
  0xab   : > { %v5317_v49 = vpack.c.bf16 %v5881_v0, %v5879_v21  ;;  %v3793_v48 = vpack.c.bf16 %v1487_v13, %v1480_v15  ;;  %v5882_v27 = vand.u32 4294901760, %v5014_v42  ;;  %v5883_v40 = vand.u32 4294901760, %v5019_v39  ;;  %3792 = vmatpush3.bf16.msra.mxu1 %v3791_v31 }
  0xac   : > { %v1494_v61 = vand.u32 4294901760, %v1493_v6  ;;  %v1501_v19 = vand.u32 4294901760, %v1500_v28  ;;  %v5884_v57 = vand.u32 4294901760, %v5024_v26  ;;  %v5885_v34 = vand.u32 4294901760, %v5031_v14  ;;  %3764 = vmatpush3.bf16.msra.mxu0 %v5310_v9  ;;  %v5890_v6 = vld [vmem:[#allocation39_spill] sm:$0xff] }
  0xad   : > { %v1381_v7 = vsub.f32 %v5014_v42, %v5882_v27  ;;  %v1388_v10 = vsub.f32 %v5019_v39, %v5883_v40  ;;  %v5887_v32 = vand.u32 4294901760, %v5886_v62  ;;  %v5888_v15 = vand.u32 4294901760, %v4924_v59  ;;  %3766 = vmatprep.subr.bf16.mxu0 %v5317_v49  ;;  %3794 = vmatprep.subr.bf16.mxu1 %v3793_v48 }
  0xae   : > { %v1507_v41 = vsub.f32 %v5024_v26, %v5884_v57  ;;  %v1514_v24 = vsub.f32 %v5031_v14, %v5885_v34  ;;  %v5889_v16 = vand.u32 4294901760, %v4929_v2  ;;  %v5891_v28 = vand.u32 4294901760, %v5890_v6  ;;  %v5899_v6 = vld [vmem:[#allocation28_spill] sm:$0xff] }
  0xaf   : > { %v5337_v13 = vpack.c.bf16 %v5888_v15, %v5887_v32  ;;  %v3795_v17 = vpack.c.bf16 %v1375_v5, %v1368_v55  ;;  %v1382_v0 = vand.u32 4294901760, %v1381_v7  ;;  %v1389_v27 = vand.u32 4294901760, %v1388_v10  ;;  %v5895_v5 = vld [vmem:[#allocation41_spill] sm:$0xff] }
  0xb0   : > { %v5343_v21 = vpack.c.bf16 %v5891_v28, %v5889_v16  ;;  %v5892_v40 = vand.u32 4294901760, %v5036_v18  ;;  %v5893_v59 = vand.u32 4294901760, %v5048_v50  ;;  %v3797_v2 = vpack.c.bf16 %v1501_v19, %v1494_v61 }
  0xb1   : > { %v1508_v62 = vand.u32 4294901760, %v1507_v41  ;;  %v1515_v32 = vand.u32 4294901760, %v1514_v24  ;;  %3768 = vmatpush3.bf16.msra.mxu0 %v5337_v13  ;;  %v5894_v55 = vand.u32 4294901760, %v4948_v29  ;;  %v5896_v31 = vand.u32 4294901760, %v5895_v5  ;;  %3796 = vmatpush3.bf16.msra.mxu1 %v3795_v17  ;;  %v5897_v24 = vld [vmem:[#allocation19_spill] sm:$0xff]  ;;  %v5903_v17 = vld [vmem:[#allocation58_spill] sm:$0xff] }
  0xb2   : > { %v1395_v57 = vsub.f32 %v5036_v18, %v5892_v40  ;;  %v1402_v34 = vsub.f32 %v5048_v50, %v5893_v59  ;;  %3770 = vmatprep.subr.bf16.mxu0 %v5343_v21  ;;  %v3805_v10 = vpack.c.bf16 %v4652_v44, %v4650_v53  ;;  %v3799_v15 = vpack.c.bf16 %v1389_v27, %v1382_v0  ;;  %v5898_v44 = vld [vmem:[#allocation16_spill] sm:$0xff]  ;;  %v5905_v0 = vld [vmem:[#allocation18_spill] sm:$0xff]  ;;  %v5908_v59 = vld [vmem:[#allocation33_spill] sm:$0xff] }
  0xb3   : > { %v5357_v7 = vpack.c.bf16 %v5896_v31, %v5894_v55  ;;  %3798 = vmatprep.subr.bf16.mxu1 %v3797_v2  ;;  %v3801_v61 = vpack.c.bf16 %v1515_v32, %v1508_v62  ;;  %v3807_v29 = vpack.c.bf16 %v4706_v60, %v4691_v58  ;;  %v3809_v19 = vpack.c.bf16 %v4719_v4, %v4714_v3  ;;  %v5900_v60 = vld [vmem:[#allocation22_spill] sm:$0xff]  ;;  %v5901_v3 = vld [vmem:[#allocation29_spill] sm:$0xff]  ;;  %v5902_v4 = vld [vmem:[#allocation31_spill] sm:$0xff] }
  0xb4   : > { %v1396_v16 = vand.u32 4294901760, %v1395_v57  ;;  %v1403_v48 = vand.u32 4294901760, %v1402_v34  ;;  %v3811_v53 = vpack.c.bf16 %v4745_v23, %v4739_v43  ;;  %v3813_v58 = vpack.c.bf16 %v5899_v6, %v4778_v11  ;;  %v5904_v43 = vld [vmem:[#allocation59_spill] sm:$0xff]  ;;  %v5906_v40 = vld [vmem:[#allocation40_spill] sm:$0xff]  ;;  %v5923_v62 = vld [vmem:[#allocation53_spill] sm:$0xff] }
  0xb5   : > { %3772 = vmatpush3.bf16.msra.mxu0 %v5357_v7  ;;  %3800 = vmatpush3.bf16.msra.mxu1 %v3799_v15  ;;  %v3815_v28 = vpack.c.bf16 %v5902_v4, %v5901_v3  ;;  %v3817_v23 = vpack.c.bf16 %v4844_v37, %v4839_v22  ;;  %v3819_v11 = vpack.c.bf16 %v4885_v33, %v4880_v46  ;;  %v5907_v22 = vld [vmem:[#allocation23_spill] sm:$0xff]  ;;  %v5922_v2 = vld [vmem:[#allocation52_spill] sm:$0xff]  ;;  %v5927_v55 = vld [vmem:[#allocation57_spill] sm:$0xff] }
  0xb6   : > { %3806 = vmatprep.subr.bf16.mxu0 %v3805_v10  ;;  %v3803_v41 = vpack.c.bf16 %v1403_v48, %v1396_v16  ;;  %3802 = vmatprep.subr.bf16.mxu1 %v3801_v61  ;;  %v3821_v27 = vpack.c.bf16 %v4911_v54, %v4891_v47  ;;  %v3823_v37 = vpack.c.bf16 %v5906_v40, %v4935_v12  ;;  %v5911_v46 = vld [vmem:[#allocation43_spill] sm:$0xff]  ;;  %v5916_v54 = vld [vmem:[#allocation46_spill] sm:$0xff]  ;;  %v5926_v32 = vld [vmem:[#allocation56_spill] sm:$0xff] }
  0xb7   : > { %v3825_v57 = vpack.c.bf16 %v4982_v8, %v4973_v56  ;;  %v3827_v33 = vpack.c.bf16 %v4997_v45, %v4992_v30  ;;  %v3829_v47 = vpack.c.bf16 %v5009_v25, %v5002_v36  ;;  %v3831_v12 = vpack.c.bf16 %v5019_v39, %v5014_v42  ;;  %v5909_v36 = vld [vmem:[#allocation42_spill] sm:$0xff]  ;;  %v5910_v42 = vld [vmem:[#allocation15_spill] sm:$0xff]  ;;  %v5919_v45 = vld [vmem:[#allocation49_spill] sm:$0xff] }
  0xb8   : > { %1288 = vmatmul.mubr.f32.vlgmr.msra.gmra.mrb[6].mxu0 %v5897_v24  ;;  %v3833_v56 = vpack.c.bf16 %v5031_v14, %v5024_v26  ;;  %v3835_v30 = vpack.c.bf16 %v5048_v50, %v5036_v18  ;;  %v5912_v39 = vld [vmem:[#allocation14_spill] sm:$0xff]  ;;  %v5913_v14 = vld [vmem:[#allocation44_spill] sm:$0xff]  ;;  %v5914_v18 = vld [vmem:[#allocation45_spill] sm:$0xff] }
  0xb9   : > { %3808 = vmatpush3.bf16.msra.mxu0 %v3807_v29  ;;  %1655 = vmatprep.mubr.f32.mxu0 %v5898_v44  ;;  %v5915_v50 = vld [vmem:[#allocation17_spill] sm:$0xff]  ;;  %v5917_v8 = vld [vmem:[#allocation47_spill] sm:$0xff]  ;;  %v5918_v26 = vld [vmem:[#allocation48_spill] sm:$0xff]  ;;  %v4040_v29 = vmov 0.0  }
  0xba   : > { %3810 = vmatprep.subr.bf16.mxu0 %v3809_v19  ;;  %3804 = vmatpush3.bf16.msra.mxu1 %v3803_v41  ;;  %v5920_v25 = vld [vmem:[#allocation50_spill] sm:$0xff]  ;;  %v5921_v34 = vld [vmem:[#allocation51_spill] sm:$0xff] }
  0xbb   : > { %3838 = vmatprep.subr.bf16.mxu1 %v5900_v60 }
  0xbd   : > { %3812 = vmatpush3.bf16.msra.mxu0 %v3811_v53  ;;  %1520 = vmatmul.mubr.f32.vlgmr.msra.gmra.mrb[6].mxu1 %v5823_v1 }
  0xbe   : > { %3814 = vmatprep.subr.bf16.mxu0 %v3813_v58  ;;  %3840 = vmatpush3.bf16.msra.mxu1 %v5903_v17  ;;  %v2951_v58 = vld [vmem:[%s5548_s5] sm:$0xff] }
  0xbf   : > { %3842 = vmatprep.subr.bf16.mxu1 %v5904_v43  ;;  %1762 = vmatprep.mubr.f32.mxu1 %v5905_v0 }
  0xc1   : > { %3816 = vmatpush3.bf16.msra.mxu0 %v3815_v28 }
  0xc2   : > { %3818 = vmatprep.subr.bf16.mxu0 %v3817_v23  ;;  %3844 = vmatpush3.bf16.msra.mxu1 %v5202_v52 }
  0xc3   : > { %3846 = vmatprep.subr.bf16.mxu1 %v5218_v63 }
  0xc5   : > { %3820 = vmatpush3.bf16.msra.mxu0 %v3819_v11 }
  0xc6   : > { %3822 = vmatprep.subr.bf16.mxu0 %v3821_v27  ;;  %3848 = vmatpush3.bf16.msra.mxu1 %v5907_v22 }
  0xc7   : > { %3850 = vmatprep.subr.bf16.mxu1 %v5908_v59 }
  0xc9   : > { %3824 = vmatpush3.bf16.msra.mxu0 %v3823_v37 }
  0xca   : > { %3826 = vmatprep.subr.bf16.mxu0 %v3825_v57  ;;  %3852 = vmatpush3.bf16.msra.mxu1 %v5258_v35 }
  0xcb   : > { %3854 = vmatprep.subr.bf16.mxu1 %v5265_v51 }
  0xcd   : > { %3828 = vmatpush3.bf16.msra.mxu0 %v3827_v33 }
  0xce   : > { %3830 = vmatprep.subr.bf16.mxu0 %v3829_v47  ;;  %3856 = vmatpush3.bf16.msra.mxu1 %v5284_v38  ;;  %v2044_v47 = vld [vmem:[%s5545_s2] sm:$0xff] }
  0xcf   : > { %3858 = vmatprep.subr.bf16.mxu1 %v5298_v20 }
  0xd1   : > { %3832 = vmatpush3.bf16.msra.mxu0 %v3831_v12  ;;  %v2047_v12 = vsel %vm2045_vm1, %v2044_v47, 0 }
  0xd2   : > { %3834 = vmatprep.subr.bf16.mxu0 %v3833_v56  ;;  %3860 = vmatpush3.bf16.msra.mxu1 %v5310_v9  ;;  %v2119_v56 = vand.u32 4294901760, %v2047_v12 }
  0xd3   : > { %3862 = vmatprep.subr.bf16.mxu1 %v5317_v49 }
  0xd5   : > { %3836 = vmatpush3.bf16.msra.mxu0 %v3835_v30  ;;  %v2120_v30 = vsub.f32 %v2047_v12, %v2119_v56 }
  0xd6   : > { %3870 = vmatprep.subr.bf16.mxu0 %v5909_v36  ;;  %3864 = vmatpush3.bf16.msra.mxu1 %v5337_v13 }
  0xd7   : > { %3866 = vmatprep.subr.bf16.mxu1 %v5343_v21 }
  0xd8   : > { %1658 = vmatmul.mubr.f32.vlgmr.msra.gmra.mrb[8].mxu0 %v5910_v42 }
  0xd9   : > { %3872 = vmatpush3.bf16.msra.mxu0 %v5911_v46  ;;  %1932 = vmatprep.mubr.f32.mxu0 %v5912_v39 }
  0xda   : > { %3874 = vmatprep.subr.bf16.mxu0 %v5913_v14  ;;  %3868 = vmatpush3.bf16.msra.mxu1 %v5357_v7  ;;  %v2121_v14 = vand.u32 4294901760, %v2120_v30 }
  0xdb   : > { %3902 = vmatprep.subr.bf16.mxu1 %v5900_v60  ;;  %v4042_v60 = vmov 0  }
  0xdc   : > { %3975 = vset.pattern.permute.xlu0 %v4042_v60 }
  0xdd   : > { %3876 = vmatpush3.bf16.msra.mxu0 %v5914_v18  ;;  %1766 = vmatmul.mubr.f32.vlgmr.msra.gmra.mrb[8].mxu1 %v5915_v50 }
  0xde   : > { %3878 = vmatprep.subr.bf16.mxu0 %v5916_v54  ;;  %3904 = vmatpush3.bf16.msra.mxu1 %v5903_v17 }
  0xdf   : > { %3906 = vmatprep.subr.bf16.mxu1 %v5904_v43  ;;  %2036 = vmatprep.mubr.f32.mxu1 %v5912_v39  ;;  %v2043_v39 = vld [vmem:[%s5544_s1] sm:$0xff] }
  0xe0   : > { %2954 = vperm.xlu0 %3975, %v2951_v58   ;;  %v2500_v54 = vsel %vm2045_vm1, %v2043_v39, 0 }
  0xe1   : > { %3880 = vmatpush3.bf16.msra.mxu0 %v5917_v8 }
  0xe2   : > { %3882 = vmatprep.subr.bf16.mxu0 %v5918_v26  ;;  %3908 = vmatpush3.bf16.msra.mxu1 %v5202_v52  ;;  %v5924_v52 = vld [vmem:[#allocation54_spill] sm:$0xff] }
  0xe3   : > { %3910 = vmatprep.subr.bf16.mxu1 %v5218_v63  ;;  %v5925_v63 = vld [vmem:[#allocation55_spill] sm:$0xff] }
  0xe5   : > { %3884 = vmatpush3.bf16.msra.mxu0 %v5919_v45  ;;  %v2122_v45 = vsub.f32 %v2120_v30, %v2121_v14 }
  0xe6   : > { %3886 = vmatprep.subr.bf16.mxu0 %v5920_v25  ;;  %3912 = vmatpush3.bf16.msra.mxu1 %v5907_v22  ;;  %v2571_v25 = vand.u32 4294901760, %v2500_v54 }
  0xe7   : > { %3914 = vmatprep.subr.bf16.mxu1 %v5908_v59 }
  0xe9   : > { %3888 = vmatpush3.bf16.msra.mxu0 %v5921_v34 }
  0xea   : > { %3890 = vmatprep.subr.bf16.mxu0 %v5922_v2  ;;  %3916 = vmatpush3.bf16.msra.mxu1 %v5258_v35 }
  0xeb   : > { %3918 = vmatprep.subr.bf16.mxu1 %v5265_v51 }
  0xed   : > { %3892 = vmatpush3.bf16.msra.mxu0 %v5923_v62 }
  0xee   : > { %3894 = vmatprep.subr.bf16.mxu0 %v5924_v52  ;;  %3920 = vmatpush3.bf16.msra.mxu1 %v5284_v38  ;;  %v2123_v52 = vand.u32 4294901760, %v2122_v45 }
  0xef   : > { %3922 = vmatprep.subr.bf16.mxu1 %v5298_v20 }
  0xf1   : > { %3896 = vmatpush3.bf16.msra.mxu0 %v5925_v63 }
  0xf2   : > { %3898 = vmatprep.subr.bf16.mxu0 %v5926_v32  ;;  %3924 = vmatpush3.bf16.msra.mxu1 %v5310_v9  ;;  %v2572_v32 = vsub.f32 %v2500_v54, %v2571_v25 }
  0xf3   : > { %3926 = vmatprep.subr.bf16.mxu1 %v5317_v49 }
  0xf5   : > { %3900 = vmatpush3.bf16.msra.mxu0 %v5927_v55 }
  0xf6   : > { %3928 = vmatpush3.bf16.msra.mxu1 %v5337_v13  ;;  %3489 = vmatprep.subr.mxu0 %v4040_v29 }
  0xf7   : > { %3930 = vmatprep.subr.bf16.mxu1 %v5343_v21 }
  0xf8   : > { %1934 = vmatmul.mubr.f32.vlgmr.msra.gmra.mrb[10].mxu0 %v5823_v1 }
  0xf9   : > { %3491 = vmatprep.mubr.msk.f32.mxu0 %vm4041_vm0, %v4040_v29 }
  0xfa   : > { %3932 = vmatpush3.bf16.msra.mxu1 %v5357_v7 }
  0xfb   : > { %3494 = vmatprep.subr.mxu1 %v4040_v29 }
  0xfd   : > { %2038 = vmatmul.mubr.f32.vlgmr.msra.gmra.mrb[10].mxu1 %v5823_v1 }
  0xfe   : > { %3496 = vmatprep.mubr.msk.f32.mxu1 %vm4041_vm0, %v4040_v29 }
 0x120   : > { %v3077_v38 = vpop.f32.mrb[0].mxu0 }
 0x121   : > { %v3078_v35 = vpop.f32.mrb[1].mxu0 }
 0x122   : > { %v3079_v51 = vadd.f32 %v3078_v35, %v3077_v38 }
 0x123   : > { %v3112_v20 = vpop.f32.mrb[0].mxu1 }
 0x124   : > { %v3113_v5 = vpop.f32.mrb[1].mxu1 }
 0x125   : > { %v3114_v9 = vadd.f32 %v3113_v5, %v3112_v20 }
 0x127   : > { %v628_v31 = vadd.f32 %v3114_v9, %v3079_v51  ;;  %v2573_v51 = vand.u32 4294901760, %v2572_v32 }
 0x140   : > { %v3147_v49 = vpop.f32.mrb[2].mxu0 }
 0x141   : > { %v3148_v10 = vpop.f32.mrb[3].mxu0 }
 0x142   : > { %v3149_v15 = vadd.f32 %v3148_v10, %v3147_v49 }
 0x144   : > { %v766_v16 = vadd.f32 %v3149_v15, %v628_v31  ;;  %v2574_v31 = vsub.f32 %v2572_v32, %v2573_v51 }
 0x145   : > { %v3182_v13 = vpop.f32.mrb[2].mxu1 }
 0x146   : > { %v3183_v48 = vpop.f32.mrb[3].mxu1  ;;  %v2575_v10 = vand.u32 4294901760, %v2574_v31 }
 0x147   : > { %v3184_v21 = vadd.f32 %v3183_v48, %v3182_v13 }
 0x149   : > { %v874_v61 = vadd.f32 %v3184_v21, %v766_v16 }
 0x165   : > { %v3217_v1 = vpop.f32.mrb[4].mxu0 }
 0x166   : > { %v3218_v7 = vpop.f32.mrb[5].mxu0 }
 0x167   : > { %v3219_v19 = vadd.f32 %v3218_v7, %v3217_v1 }
 0x169   : > { %v1042_v41 = vadd.f32 %v3219_v19, %v874_v61 }
 0x16b   : > { %v3252_v24 = vpop.f32.mrb[4].mxu1 }
 0x16c   : > { %v3253_v53 = vpop.f32.mrb[5].mxu1 }
 0x16d   : > { %v3254_v44 = vadd.f32 %v3253_v53, %v3252_v24 }
 0x16f   : > { %v1146_v6 = vadd.f32 %v3254_v44, %v1042_v41 }
 0x171   : > { %v2503_v2 = vsel %vm2049_vm2, %v1146_v6, 0 }
 0x172   : > { %v2506_v55 = vand.u32 4294901760, %v2503_v2 }
 0x174   : > { %v2583_v20 = vsub.f32 %v2503_v2, %v2506_v55 }
 0x176   : > { %v2584_v49 = vand.u32 4294901760, %v2583_v20 }
 0x178   : > { %v2585_v15 = vsub.f32 %v2583_v20, %v2584_v49 }
 0x17a   : > { %v2586_v16 = vand.u32 4294901760, %v2585_v15 }
 0x18b   : > { %v3287_v3 = vpop.f32.mrb[6].mxu0 }
 0x18c   : > { %v3288_v4 = vpop.f32.mrb[7].mxu0 }
 0x18d   : > { %v3289_v28 = vadd.f32 %v3288_v4, %v3287_v3 }
 0x190   : > { %v3322_v17 = vpop.f32.mrb[6].mxu1 }
 0x191   : > { %v3323_v23 = vpop.f32.mrb[7].mxu1 }
 0x192   : > { %v3324_v43 = vadd.f32 %v3323_v23, %v3322_v17 }
 0x194   : > { %v1522_v0 = vadd.f32 %v3324_v43, %v3289_v28 }
 0x1ab   : > { %v3357_v11 = vpop.f32.mrb[8].mxu0 }
 0x1ac   : > { %v3358_v27 = vpop.f32.mrb[9].mxu0 }
 0x1ad   : > { %v3359_v40 = vadd.f32 %v3358_v27, %v3357_v11 }
 0x1af   : > { %v1660_v37 = vadd.f32 %v3359_v40, %v1522_v0 }
 0x1b0   : > { %v3392_v22 = vpop.f32.mrb[8].mxu1 }
 0x1b1   : > { %v3393_v57 = vpop.f32.mrb[9].mxu1 }
 0x1b2   : > { %v3394_v59 = vadd.f32 %v3393_v57, %v3392_v22 }
 0x1b4   : > { %v1768_v33 = vadd.f32 %v3394_v59, %v1660_v37 }
 0x1cb   : > { %v3427_v36 = vpop.f32.mrb[10].mxu0 }
 0x1cc   : > { %v3428_v42 = vpop.f32.mrb[11].mxu0 }
 0x1cd   : > { %v3429_v46 = vadd.f32 %v3428_v42, %v3427_v36 }
 0x1cf   : > { %v1936_v18 = vadd.f32 %v3429_v46, %v1768_v33 }
 0x1d0   : > { %v3462_v50 = vpop.f32.mrb[10].mxu1 }
 0x1d1   : > { %v3463_v8 = vpop.f32.mrb[11].mxu1 }
 0x1d2   : > { %v3464_v26 = vadd.f32 %v3463_v8, %v3462_v50 }
 0x1d4   : > { %v2040_v34 = vadd.f32 %v3464_v26, %v1936_v18 }
 0x1d6   : > { %v2051_v62 = vsel %vm2049_vm2, %v2040_v34, 0 }
 0x1d7   : > { %v2054_v63 = vand.u32 4294901760, %v2051_v62 }
 0x1d9   : > { %v2131_v38 = vsub.f32 %v2051_v62, %v2054_v63  ;;  %3490 = vmatpush3.msra.mxu0 %v2054_v63 }
 0x1da   : > { %3492 = vmatmul.mubr.f32.vlgmr.msra.gmra.mrb[12].mxu0 %v2123_v52  ;;  %3499 = vmatprep.subr.mxu0 %v4040_v29 }
 0x1db   : > { %3500 = vmatpush3.msra.mxu0 %v2131_v38  ;;  %3501 = vmatprep.mubr.msk.f32.mxu0 %vm4041_vm0, %v4040_v29  ;;  %v2132_v35 = vand.u32 4294901760, %v2131_v38 }
 0x1dc   : > { %3509 = vmatprep.subr.mxu0 %v4040_v29 }
 0x1dd   : > { %v2133_v5 = vsub.f32 %v2131_v38, %v2132_v35 }
 0x1de   : > { %3502 = vmatmul.mubr.f32.vlgmr.msra.gmra.mrb[14].mxu0 %v2120_v30  ;;  %v2955_v30 = vpop.permute.xlu0 %2954 }
 0x1df   : > { %3510 = vmatpush3.msra.mxu0 %v2132_v35  ;;  %v2134_v9 = vand.u32 4294901760, %v2133_v5  ;;  %3511 = vmatprep.mubr.msk.f32.mxu0 %vm4041_vm0, %v4040_v29 }
 0x1e0   : > { %3519 = vmatprep.subr.mxu0 %v4040_v29 }
 0x1e1   : > { %3495 = vmatpush3.msra.mxu1 %v2134_v9 }
 0x1e2   : > { %3497 = vmatmul.mubr.f32.vlgmr.msra.gmra.mrb[12].mxu1 %v2119_v56  ;;  %3504 = vmatprep.subr.mxu1 %v4040_v29 }
 0x1e3   : > { %3512 = vmatmul.mubr.f32.vlgmr.msra.gmra.mrb[16].mxu0 %v2119_v56  ;;  %3505 = vmatpush3.msra.mxu1 %v2054_v63 }
 0x1e4   : > { %3520 = vmatpush3.msra.mxu0 %v2506_v55  ;;  %3506 = vmatprep.mubr.msk.f32.mxu1 %vm4041_vm0, %v4040_v29 }
 0x1e5   : > { %3514 = vmatprep.subr.mxu1 %v4040_v29  ;;  %3521 = vmatprep.mubr.msk.f32.mxu0 %vm4041_vm0, %v4040_v29 }
 0x1e6   : > { %3529 = vmatprep.subr.mxu0 %v4040_v29  ;;  %3507 = vmatmul.mubr.f32.vlgmr.msra.gmra.mrb[14].mxu1 %v2121_v14 }
 0x1e7   : > { %3515 = vmatpush3.msra.mxu1 %v2054_v63  ;;  %3522 = vmatmul.mubr.f32.vlgmr.msra.gmra.mrb[18].mxu0 %v2575_v10 }
 0x1e8   : > { %3530 = vmatpush3.msra.mxu0 %v2583_v20  ;;  %3516 = vmatprep.mubr.msk.f32.mxu1 %vm4041_vm0, %v4040_v29 }
 0x1e9   : > { %3524 = vmatprep.subr.mxu1 %v4040_v29  ;;  %3531 = vmatprep.mubr.msk.f32.mxu0 %vm4041_vm0, %v4040_v29 }
 0x1ea   : > { %3539 = vmatprep.subr.mxu0 %v4040_v29  ;;  %3517 = vmatmul.mubr.f32.vlgmr.msra.gmra.mrb[16].mxu1 %v2119_v56 }
 0x1eb   : > { %3525 = vmatpush3.msra.mxu1 %v2586_v16  ;;  %3532 = vmatmul.mubr.f32.vlgmr.msra.gmra.mrb[20].mxu0 %v2572_v32 }
 0x1ec   : > { %3540 = vmatpush3.msra.mxu0 %v2584_v49  ;;  %3526 = vmatprep.mubr.msk.f32.mxu1 %vm4041_vm0, %v4040_v29 }
 0x1ed   : > { %3534 = vmatprep.subr.mxu1 %v4040_v29  ;;  %3541 = vmatprep.mubr.msk.f32.mxu0 %vm4041_vm0, %v4040_v29 }
 0x1ee   : > { %3527 = vmatmul.mubr.f32.vlgmr.msra.gmra.mrb[18].mxu1 %v2571_v25 }
 0x1ef   : > { %3535 = vmatpush3.msra.mxu1 %v2506_v55  ;;  %3536 = vmatprep.mubr.msk.f32.mxu1 %vm4041_vm0, %v4040_v29 }
 0x1f0   : > { %3544 = vmatprep.subr.mxu1 %v4040_v29  ;;  %3542 = vmatmul.mubr.f32.vlgmr.msra.gmra.mrb[22].mxu0 %v2571_v25 }
 0x1f2   : > { %3537 = vmatmul.mubr.f32.vlgmr.msra.gmra.mrb[20].mxu1 %v2573_v51 }
 0x1f3   : > { %3545 = vmatpush3.msra.mxu1 %v2506_v55  ;;  %3546 = vmatprep.mubr.msk.f32.mxu1 %vm4041_vm0, %v4040_v29 }
 0x1f6   : > { %3547 = vmatmul.mubr.f32.vlgmr.msra.gmra.mrb[22].mxu1 %v2571_v25 }
 0x2ad   : > { %v2125_v13 = vpop.f32.mrb[12].mxu0 }
 0x2ae   : > { %v3493_v48 = vpop.f32.mrb[13].mxu0 }
 0x2b1   : > { %v2275_v21 = vpop.f32.mrb[14].mxu0 }
 0x2b2   : > { %v3503_v61 = vpop.f32.mrb[15].mxu0 }
 0x2b5   : > { %v2201_v1 = vpop.f32.mrb[12].mxu1 }
 0x2b6   : > { %v2202_v7 = vadd.f32 %v2201_v1, %v2125_v13  ;;  %v3498_v19 = vpop.f32.mrb[13].mxu1  ;;  %v2423_v41 = vpop.f32.mrb[16].mxu0 }
 0x2b7   : > { %v3513_v24 = vpop.f32.mrb[17].mxu0 }
 0x2b8   : > { %v2276_v53 = vadd.f32 %v2275_v21, %v2202_v7 }
 0x2b9   : > { %v2349_v44 = vpop.f32.mrb[14].mxu1 }
 0x2ba   : > { %v2350_v6 = vadd.f32 %v2349_v44, %v2276_v53  ;;  %v3508_v58 = vpop.f32.mrb[15].mxu1  ;;  %v2577_v60 = vpop.f32.mrb[18].mxu0 }
 0x2bb   : > { %v3523_v3 = vpop.f32.mrb[19].mxu0 }
 0x2bc   : > { %v2424_v4 = vadd.f32 %v2423_v41, %v2350_v6 }
 0x2bd   : > { %v2495_v28 = vpop.f32.mrb[16].mxu1 }
 0x2be   : > { %v2496_v29 = vadd.f32 %v2495_v28, %v2424_v4  ;;  %v3518_v17 = vpop.f32.mrb[17].mxu1  ;;  %v2727_v23 = vpop.f32.mrb[20].mxu0 }
 0x2bf   : > { %v3533_v43 = vpop.f32.mrb[21].mxu0 }
 0x2c0   : > { %v2578_v0 = vadd.f32 %v2577_v60, %v2496_v29 }
 0x2c1   : > { %v2653_v11 = vpop.f32.mrb[18].mxu1 }
 0x2c2   : > { %v2654_v27 = vadd.f32 %v2653_v11, %v2578_v0  ;;  %v3528_v40 = vpop.f32.mrb[19].mxu1 }
 0x2c3   : > { %v2875_v37 = vpop.f32.mrb[22].mxu0 }
 0x2c4   : > { %v2728_v22 = vadd.f32 %v2727_v23, %v2654_v27  ;;  %v3543_v57 = vpop.f32.mrb[23].mxu0 }
 0x2c5   : > { %v2801_v59 = vpop.f32.mrb[20].mxu1 }
 0x2c6   : > { %v2802_v33 = vadd.f32 %v2801_v59, %v2728_v22  ;;  %v3538_v47 = vpop.f32.mrb[21].mxu1 }
 0x2c8   : > { %v2876_v12 = vadd.f32 %v2875_v37, %v2802_v33 }
 0x2c9   : > { %v2947_v56 = vpop.f32.mrb[22].mxu1 }
 0x2ca   : > { %v2948_v36 = vadd.f32 %v2947_v56, %v2876_v12  ;;  %v3548_v42 = vpop.f32.mrb[23].mxu1 }
 0x2cc   : > { %v2957_v46 = vadd.f32 %v2955_v30, %v2948_v36 }
 0x2ce   : > { %2959 = vst.msk [vmem:[%s244_s16] sm:$0xff] %vm2958_vm3, %v2957_v46 }
 0x2cf   : > { %3989 = shalt.err (!%p3986_p3)
}
 0x2d0   : > { %s3990_s10 = scalar_lea.hbm %s5501_s20, 128  ;;  %s3994_s13 = scalar_lea.hbm %s5549_s6, 256 }
 0x2d1   : > { %p3991_p4 = scmp.ne.s32.totalorder %s5501_s20, %s3990_s10  ;;  %p3995_p9 = scmp.lt.u32.totalorder %s5501_s20, %s5549_s6 }
 0x2d2   : > { %p3996_p10 = scmp.lt.u32.totalorder %s3994_s13, %s3990_s10  ;;  %p3998_p12 = scmp.lt.u32.totalorder %s3990_s10, %s5501_s20 }
 0x2d3   : > { %p3992_p7 = pnand %p3991_p4, %p4117_p5 }
 0x2d4   : > { %p3997_p11 = por %p3996_p10, %p3995_p9 }
 0x2d5   : > { %p3993_p8 = pneg %p3992_p7 }
 0x2d6   : > { %p3999_p13 = por %p3998_p12, %p3997_p11 }
 0x2d8   : > { %p4000_p0 = pnand %p3999_p13, %p3993_p8 }
 0x2da   : > { %4003 = shalt.err (!%p4000_p0)
}
 0x2db   : > { %3933 = dma.vmem_to_hbm [thread:$0]  (%p4117_p5), %s5503_s17, 128, %s5501_s20, %s2961_s26  }
 0x2dc PF: > { %p3939_p1 = scmp.ge.s32.totalorder %s4038_s24, 2  ;;  %s2986_s16 = sand.u32 1, %s4026_s21  }
 0x2dd   : > { %s2987_s18 = scalar_lea.sflag [#allocation3], %s2986_s16 }
 0x2de   : > { %p3936_p2 = pnand %p3939_p1, %p4121_p6 }
 0x2e0   : > { %4021 = dma.done.wait (!%p3936_p2), %s2987_s18, 128  }
 0x2e1   : > { %4023 = vsyncadd (!%p3936_p2), %s2987_s18, 4294967168  ;;  %p16_p3 = scmp.ge.s32.totalorder %s4104_s27, 4   ;;  %s5928_s21 = smov %s4030_s22 }
 0x2e2   : > { %s5929_s22 = smov %s4034_s23  ;;  %s5930_s23 = smov %s4115_s30 }
 0x2e3   : > { %s5931_s24 = smov %s4104_s27  ;;  %18 = sbr.rel (!%p16_p3) target bundleno = 3 (0x3), region = 79 }
 0x2ea   :  { %2992 = vsyncpa [#allocation3], 1 }
 0x2eb   :  { %2994 = vsyncpa [#allocation3 + $0x1], 1 }

</bundles_post_ra>
